<compile_context>
chip_gen: v6e
topology: v6e:2x2x1
jax: 0.10.0
libtpu: 0.0.40
codegen_flags: <defaults>
</compile_context>

<pallas_src>
import functools
import math

import jax
import jax.numpy as jnp
from jax.experimental import pallas as pl
from jax.experimental.pallas import tpu as pltpu


def _softplus(x):
    # Numerically stable log(1 + exp(x)).
    return jnp.maximum(x, 0.0) + jnp.log1p(jnp.exp(-jnp.abs(x)))


def _round_up(x, m):
    return (x + m - 1) // m * m


def _pad_to(a, shape, fill=0.0):
    """Pad `a` up to `shape` with `fill`. No copy if already that shape."""
    if tuple(a.shape) == tuple(shape):
        return a
    out = jnp.full(shape, fill, a.dtype)
    return out.at[tuple(slice(0, d) for d in a.shape)].set(a)


# --------------------------------------------------------------------------- #
# Fused kernel:  out[s] = X @ (w_mu + sigma_w * eps_w[s]) + (b_mu + sigma_b*eps_b[s])
#                kl_part[j] = sum over this j's columns of the KL terms.
# Grid = (nj, nk); k (reduction over input_dim) is innermost; the S MC samples
# are an in-kernel unrolled loop so each weight tile is read from HBM once.
# --------------------------------------------------------------------------- #
def _normal_fwd_kl_kernel(x_ref, w_mu_ref, sigma_w_ref, eps_w_ref,
                          b_mu_ref, sigma_b_ref, eps_b_ref,
                          out_ref, kl_ref, *,
                          log_sigma_prior, half_inv_sp_sq, use_bf16_matmul):
    k = pl.program_id(1)
    num_k = pl.num_programs(1)
    S = out_ref.shape[0]

    @pl.when(k == 0)
    def _init():
        out_ref[...] = jnp.zeros_like(out_ref)
        kl_ref[...] = jnp.zeros_like(kl_ref)

    # Load each weight-shaped tile exactly once; reused for all S samples + KL.
    x = x_ref[...]                        # (B_pad, tk)  f32
    mu = w_mu_ref[...]                    # (tk, tn)
    sig = sigma_w_ref[...]                # (tk, tn)   softplus hoisted to XLA
    x_mm = x.astype(jnp.bfloat16) if use_bf16_matmul else x

    # ---- forward: accumulate directly into out_ref (block idx const over k) --
    for s in range(S):                    # static unroll; S is small
        w = mu + sig * eps_w_ref[s]       # FMA only, no transcendentals
        if use_bf16_matmul:
            w = w.astype(jnp.bfloat16)
        out_ref[s] = out_ref[s] + jnp.dot(x_mm, w,
                                          preferred_element_type=jnp.float32)

    # ---- KL over the weights: each (j, k) tile is visited exactly once -------
    kl_w = (log_sigma_prior - jnp.log(sig)
            + (sig * sig + mu * mu) * half_inv_sp_sq - 0.5)
    kl_ref[...] = kl_ref[...] + jnp.sum(kl_w)

    # ---- epilogue at the last reduction step: bias add + bias KL -------------
    @pl.when(k == num_k - 1)
    def _epilogue():
        bmu = b_mu_ref[...]               # (1, tn)
        bsig = sigma_b_ref[...]           # (1, tn)
        for s in range(S):
            out_ref[s] = out_ref[s] + (bmu + bsig * eps_b_ref[s])
        kl_b = (log_sigma_prior - jnp.log(bsig)
                + (bsig * bsig + bmu * bmu) * half_inv_sp_sq - 0.5)
        kl_ref[...] = kl_ref[...] + jnp.sum(kl_b)


# --------------------------------------------------------------------------- #
# Wrapper
# --------------------------------------------------------------------------- #
def normal_layer_forward(x, w_mu, w_rho, b_mu, b_rho, eps_w, eps_b, rho_prior,
                         *, tk_cap=512, tn_cap=512, use_bf16_matmul=False):
    """NormalLayer forward for S fused MC samples.

    x:            [B, K]     float32
    w_mu, w_rho:  [K, N]
    b_mu, b_rho:  [N]
    eps_w:        [S, K, N]  N(0,1) noise (drawn outside the kernel)
    eps_b:        [S, N]
    rho_prior:    python float
    Returns (output [S, B, N], kl scalar).
    """
    x = x.astype(jnp.float32)
    B, K = x.shape
    _, N = w_mu.shape
    S = eps_w.shape[0]
    rho_prior_f = float(rho_prior)

    # Hoisted softplus (cheap XLA elementwise; same HBM bytes as rho).
    sigma_w = _softplus(w_rho.astype(jnp.float32))
    sigma_b = _softplus(b_rho.astype(jnp.float32))
    sigma_prior = math.log1p(math.exp(rho_prior_f))        # host scalar

    # Tile sizes: largest 128-multiple up to the cap; pad dims up to the tile.
    B_pad = _round_up(B, 8)
    tk = min(tk_cap, _round_up(K, 128))
    tn = min(tn_cap, _round_up(N, 128))
    K_pad = _round_up(K, tk)
    N_pad = _round_up(N, tn)
    nj, nk = N_pad // tn, K_pad // tk

    # Zero-safe padding (no copy when shapes are already aligned):
    #   mu = 0, sigma = sigma_prior, eps = 0, x = 0
    #   => padded w = 0 (no matmul contribution), per-element KL = 0.
    sp = jnp.float32(sigma_prior)
    x_p = _pad_to(x, (B_pad, K_pad))
    w_mu_p = _pad_to(w_mu.astype(jnp.float32), (K_pad, N_pad))
    sigma_w_p = _pad_to(sigma_w, (K_pad, N_pad), fill=sp)
    eps_w_p = _pad_to(eps_w.astype(jnp.float32), (S, K_pad, N_pad))
    b_mu_p = _pad_to(b_mu.astype(jnp.float32).reshape(1, N), (1, N_pad))
    sigma_b_p = _pad_to(sigma_b.reshape(1, N), (1, N_pad), fill=sp)
    eps_b_p = _pad_to(eps_b.astype(jnp.float32).reshape(S, 1, N), (S, 1, N_pad))

    kernel = functools.partial(
        _normal_fwd_kl_kernel,
        log_sigma_prior=math.log(sigma_prior),
        half_inv_sp_sq=0.5 / (sigma_prior * sigma_prior),
        use_bf16_matmul=use_bf16_matmul)

    # Double-buffered VMEM footprint estimate -> explicit scoped-VMEM limit
    # (keeps v5e's 16 MiB default from throttling and stays under v7x's 64 MiB).
    per_step_floats = (B_pad * tk + 2 * tk * tn + S * tk * tn
                       + 2 * tn + S * tn + S * B_pad * tn + 8 * 128)
    vmem_est = 2 * 4 * per_step_floats
    vmem_limit = int(min(max(int(vmem_est * 1.25) + (2 << 20), 32 << 20), 64 << 20))

    out_p, kl_parts = pl.pallas_call(
        kernel,
        out_shape=(jax.ShapeDtypeStruct((S, B_pad, N_pad), jnp.float32),
                   jax.ShapeDtypeStruct((nj, 8, 128), jnp.float32)),
        grid_spec=pltpu.PrefetchScalarGridSpec(
            num_scalar_prefetch=0,
            grid=(nj, nk),                                     # k (reduction) last
            in_specs=[
                pl.BlockSpec((B_pad, tk), lambda j, k: (0, k)),      # x
                pl.BlockSpec((tk, tn), lambda j, k: (k, j)),         # w_mu
                pl.BlockSpec((tk, tn), lambda j, k: (k, j)),         # sigma_w
                pl.BlockSpec((S, tk, tn), lambda j, k: (0, k, j)),   # eps_w
                pl.BlockSpec((1, tn), lambda j, k: (0, j)),          # b_mu
                pl.BlockSpec((1, tn), lambda j, k: (0, j)),          # sigma_b
                pl.BlockSpec((S, 1, tn), lambda j, k: (0, 0, j)),    # eps_b
            ],
            out_specs=[
                pl.BlockSpec((S, B_pad, tn), lambda j, k: (0, 0, j)),  # output
                pl.BlockSpec((1, 8, 128), lambda j, k: (j, 0, 0)),     # KL per-j
            ],
        ),
        compiler_params=pltpu.CompilerParams(
            dimension_semantics=("parallel", "arbitrary"),
            vmem_limit_bytes=vmem_limit),
    )(x_p, w_mu_p, sigma_w_p, eps_w_p, b_mu_p, sigma_b_p, eps_b_p)

    out = out_p[:, :B, :N]
    kl = jnp.sum(kl_parts[:, 0, 0])      # per-j partials (all lanes equal) -> scalar
    return out, kl


if __name__ == "__main__":
    # Small, lane-aligned shapes consistent with the module (Linear-style fwd).
    batch, input_dim, output_dim = 8, 256, 128
    n_samples = 4                # MC samples fused into one pallas_call
    rho_prior = -1.0
    rho0 = -6.0

    key = jax.random.PRNGKey(0)
    k_wmu, k_bmu, k_x, k_ew, k_eb = jax.random.split(key, 5)

    # Parameter init matching __init__ shapes/distributions.
    w_mu = jax.random.uniform(k_wmu, (input_dim, output_dim), jnp.float32, -0.6, 0.6)
    w_rho = jnp.full((input_dim, output_dim), rho0, jnp.float32)
    b_mu = jax.random.uniform(k_bmu, (output_dim,), jnp.float32, -0.6, 0.6)
    b_rho = jnp.full((output_dim,), rho0, jnp.float32)

    x = jax.random.normal(k_x, (batch, input_dim), jnp.float32)
    eps_w = jax.random.normal(k_ew, (n_samples, input_dim, output_dim), jnp.float32)
    eps_b = jax.random.normal(k_eb, (n_samples, output_dim), jnp.float32)

    out, kl = normal_layer_forward(x, w_mu, w_rho, b_mu, b_rho,
                                   eps_w, eps_b, rho_prior)
    jax.block_until_ready((out, kl))
    assert out.shape == (n_samples, batch, output_dim)

    # Pure-JAX reference with identical math to the PyTorch module.
    sigma_w = jnp.log1p(jnp.exp(w_rho))
    sigma_b = jnp.log1p(jnp.exp(b_rho))
    sigma_p = jnp.log1p(jnp.exp(jnp.float32(rho_prior)))
    ok = True
    for s in range(n_samples):
        w = w_mu + sigma_w * eps_w[s]
        b = b_mu + sigma_b * eps_b[s]
        ref = x @ w + b[None, :]
        ok &= bool(jnp.allclose(out[s], ref, atol=1e-4, rtol=1e-4))
    kl_w_ref = (jnp.log(sigma_p) - jnp.log(sigma_w)
                + 0.5 * (sigma_w ** 2 + w_mu ** 2) / sigma_p ** 2 - 0.5)
    kl_b_ref = (jnp.log(sigma_p) - jnp.log(sigma_b)
                + 0.5 * (sigma_b ** 2 + b_mu ** 2) / sigma_p ** 2 - 0.5)
    kl_ref = jnp.sum(kl_w_ref) + jnp.sum(kl_b_ref)
    ok &= bool(jnp.allclose(kl, kl_ref, atol=1e-1, rtol=1e-4))

    assert ok
    print("KERNEL_OK")
</pallas_src>

<mosaic_0001>
module attributes {stable_mosaic.version = 11 : i64} {
  func.func @_normal_fwd_kl_kernel(%arg0: i32, %arg1: i32, %arg2: memref<8x256xf32, #tpu.memory_space<vmem>>, %arg3: memref<256x128xf32, #tpu.memory_space<vmem>>, %arg4: memref<256x128xf32, #tpu.memory_space<vmem>>, %arg5: memref<4x256x128xf32, #tpu.memory_space<vmem>>, %arg6: memref<1x128xf32, #tpu.memory_space<vmem>>, %arg7: memref<1x128xf32, #tpu.memory_space<vmem>>, %arg8: memref<4x1x128xf32, #tpu.memory_space<vmem>>, %arg9: memref<4x8x128xf32, #tpu.memory_space<vmem>>, %arg10: memref<1x8x128xf32, #tpu.memory_space<vmem>>) attributes {dimension_semantics = [#tpu.dimension_semantics<parallel>, #tpu.dimension_semantics<arbitrary>], iteration_bounds = array<i64: 1, 1>, scalar_prefetch = 0 : i64, scratch_operands = 0 : i64, tpu.core_type = #tpu.core_type<tc>, window_params = [{transform_indices = @transform_0, window_bounds = array<i64: 8, 256>}, {transform_indices = @transform_1, window_bounds = array<i64: 256, 128>}, {transform_indices = @transform_2, window_bounds = array<i64: 256, 128>}, {transform_indices = @transform_3, window_bounds = array<i64: 4, 256, 128>}, {transform_indices = @transform_4, window_bounds = array<i64: 1, 128>}, {transform_indices = @transform_5, window_bounds = array<i64: 1, 128>}, {transform_indices = @transform_6, window_bounds = array<i64: 4, 1, 128>}, {transform_indices = @transform_7, window_bounds = array<i64: 4, 8, 128>}, {transform_indices = @transform_8, window_bounds = array<i64: 1, 8, 128>}]} {
    %c0_i32 = arith.constant 0 : i32
    %0 = arith.cmpi eq, %arg1, %c0_i32 : i32
    %1 = arith.extui %0 : i1 to i32
    %c0_i32_0 = arith.constant 0 : i32
    %2 = arith.cmpi ne, %1, %c0_i32_0 : i32
    scf.if %2 {
      %cst_54 = arith.constant 0.000000e+00 : f32
      %72 = vector.broadcast %cst_54 : f32 to vector<4x8x128xf32>
      %c0_55 = arith.constant 0 : index
      %c0_56 = arith.constant 0 : index
      %c0_57 = arith.constant 0 : index
      %73 = vector.load %arg9[%c0_55, %c0_56, %c0_57] : memref<4x8x128xf32, #tpu.memory_space<vmem>>, vector<4x8x128xf32>
      tpu.vector_store %arg9[%c0_55, %c0_56, %c0_57], %72 {strides = array<i32>} : memref<4x8x128xf32, #tpu.memory_space<vmem>>, vector<4x8x128xf32>,
      %cst_58 = arith.constant 0.000000e+00 : f32
      %74 = vector.broadcast %cst_58 : f32 to vector<1x8x128xf32>
      %c0_59 = arith.constant 0 : index
      %c0_60 = arith.constant 0 : index
      %c0_61 = arith.constant 0 : index
      %75 = vector.load %arg10[%c0_59, %c0_60, %c0_61] : memref<1x8x128xf32, #tpu.memory_space<vmem>>, vector<1x8x128xf32>
      tpu.vector_store %arg10[%c0_59, %c0_60, %c0_61], %74 {strides = array<i32>} : memref<1x8x128xf32, #tpu.memory_space<vmem>>, vector<1x8x128xf32>,
    } else {
    }
    %c0 = arith.constant 0 : index
    %c0_1 = arith.constant 0 : index
    %3 = vector.load %arg2[%c0, %c0_1] : memref<8x256xf32, #tpu.memory_space<vmem>>, vector<8x256xf32>
    %c0_2 = arith.constant 0 : index
    %c0_3 = arith.constant 0 : index
    %4 = vector.load %arg3[%c0_2, %c0_3] : memref<256x128xf32, #tpu.memory_space<vmem>>, vector<256x128xf32>
    %c0_4 = arith.constant 0 : index
    %c0_5 = arith.constant 0 : index
    %5 = vector.load %arg4[%c0_4, %c0_5] : memref<256x128xf32, #tpu.memory_space<vmem>>, vector<256x128xf32>
    %c0_6 = arith.constant 0 : index
    %c0_7 = arith.constant 0 : index
    %c0_8 = arith.constant 0 : index
    %6 = vector.load %arg5[%c0_6, %c0_7, %c0_8] : memref<4x256x128xf32, #tpu.memory_space<vmem>>, vector<1x256x128xf32>
    %7 = vector.shape_cast %6 : vector<1x256x128xf32> to vector<256x128xf32>
    %8 = arith.mulf %5, %7 : vector<256x128xf32>
    %9 = arith.addf %4, %8 : vector<256x128xf32>
    %c0_9 = arith.constant 0 : index
    %c0_10 = arith.constant 0 : index
    %c0_11 = arith.constant 0 : index
    %10 = vector.load %arg9[%c0_9, %c0_10, %c0_11] : memref<4x8x128xf32, #tpu.memory_space<vmem>>, vector<1x8x128xf32>
    %11 = vector.shape_cast %10 : vector<1x8x128xf32> to vector<8x128xf32>
    %cst = arith.constant dense<0.000000e+00> : vector<8x128xf32>
    %12 = tpu.matmul %3, %9, %cst {dimension_numbers = #tpu.dot_dimension_numbers<[1], [0], [0], [1], [0, 0, 1, 1], [], []>} : vector<8x256xf32>, vector<256x128xf32>, vector<8x128xf32> -> vector<8x128xf32>
    %13 = arith.addf %11, %12 : vector<8x128xf32>
    %c0_12 = arith.constant 0 : index
    %c0_13 = arith.constant 0 : index
    %c0_14 = arith.constant 0 : index
    %14 = vector.load %arg9[%c0_12, %c0_13, %c0_14] : memref<4x8x128xf32, #tpu.memory_space<vmem>>, vector<1x8x128xf32>
    %15 = vector.shape_cast %14 : vector<1x8x128xf32> to vector<8x128xf32>
    %16 = vector.shape_cast %13 : vector<8x128xf32> to vector<1x8x128xf32>
    tpu.vector_store %arg9[%c0_12, %c0_13, %c0_14], %16 {strides = array<i32>} : memref<4x8x128xf32, #tpu.memory_space<vmem>>, vector<1x8x128xf32>,
    %c1 = arith.constant 1 : index
    %c0_15 = arith.constant 0 : index
    %c0_16 = arith.constant 0 : index
    %17 = vector.load %arg5[%c1, %c0_15, %c0_16] : memref<4x256x128xf32, #tpu.memory_space<vmem>>, vector<1x256x128xf32>
    %18 = vector.shape_cast %17 : vector<1x256x128xf32> to vector<256x128xf32>
    %19 = arith.mulf %5, %18 : vector<256x128xf32>
    %20 = arith.addf %4, %19 : vector<256x128xf32>
    %c1_17 = arith.constant 1 : index
    %c0_18 = arith.constant 0 : index
    %c0_19 = arith.constant 0 : index
    %21 = vector.load %arg9[%c1_17, %c0_18, %c0_19] : memref<4x8x128xf32, #tpu.memory_space<vmem>>, vector<1x8x128xf32>
    %22 = vector.shape_cast %21 : vector<1x8x128xf32> to vector<8x128xf32>
    %cst_20 = arith.constant dense<0.000000e+00> : vector<8x128xf32>
    %23 = tpu.matmul %3, %20, %cst_20 {dimension_numbers = #tpu.dot_dimension_numbers<[1], [0], [0], [1], [0, 0, 1, 1], [], []>} : vector<8x256xf32>, vector<256x128xf32>, vector<8x128xf32> -> vector<8x128xf32>
    %24 = arith.addf %22, %23 : vector<8x128xf32>
    %c1_21 = arith.constant 1 : index
    %c0_22 = arith.constant 0 : index
    %c0_23 = arith.constant 0 : index
    %25 = vector.load %arg9[%c1_21, %c0_22, %c0_23] : memref<4x8x128xf32, #tpu.memory_space<vmem>>, vector<1x8x128xf32>
    %26 = vector.shape_cast %25 : vector<1x8x128xf32> to vector<8x128xf32>
    %27 = vector.shape_cast %24 : vector<8x128xf32> to vector<1x8x128xf32>
    tpu.vector_store %arg9[%c1_21, %c0_22, %c0_23], %27 {strides = array<i32>} : memref<4x8x128xf32, #tpu.memory_space<vmem>>, vector<1x8x128xf32>,
    %c2 = arith.constant 2 : index
    %c0_24 = arith.constant 0 : index
    %c0_25 = arith.constant 0 : index
    %28 = vector.load %arg5[%c2, %c0_24, %c0_25] : memref<4x256x128xf32, #tpu.memory_space<vmem>>, vector<1x256x128xf32>
    %29 = vector.shape_cast %28 : vector<1x256x128xf32> to vector<256x128xf32>
    %30 = arith.mulf %5, %29 : vector<256x128xf32>
    %31 = arith.addf %4, %30 : vector<256x128xf32>
    %c2_26 = arith.constant 2 : index
    %c0_27 = arith.constant 0 : index
    %c0_28 = arith.constant 0 : index
    %32 = vector.load %arg9[%c2_26, %c0_27, %c0_28] : memref<4x8x128xf32, #tpu.memory_space<vmem>>, vector<1x8x128xf32>
    %33 = vector.shape_cast %32 : vector<1x8x128xf32> to vector<8x128xf32>
    %cst_29 = arith.constant dense<0.000000e+00> : vector<8x128xf32>
    %34 = tpu.matmul %3, %31, %cst_29 {dimension_numbers = #tpu.dot_dimension_numbers<[1], [0], [0], [1], [0, 0, 1, 1], [], []>} : vector<8x256xf32>, vector<256x128xf32>, vector<8x128xf32> -> vector<8x128xf32>
    %35 = arith.addf %33, %34 : vector<8x128xf32>
    %c2_30 = arith.constant 2 : index
    %c0_31 = arith.constant 0 : index
    %c0_32 = arith.constant 0 : index
    %36 = vector.load %arg9[%c2_30, %c0_31, %c0_32] : memref<4x8x128xf32, #tpu.memory_space<vmem>>, vector<1x8x128xf32>
    %37 = vector.shape_cast %36 : vector<1x8x128xf32> to vector<8x128xf32>
    %38 = vector.shape_cast %35 : vector<8x128xf32> to vector<1x8x128xf32>
    tpu.vector_store %arg9[%c2_30, %c0_31, %c0_32], %38 {strides = array<i32>} : memref<4x8x128xf32, #tpu.memory_space<vmem>>, vector<1x8x128xf32>,
    %c3 = arith.constant 3 : index
    %c0_33 = arith.constant 0 : index
    %c0_34 = arith.constant 0 : index
    %39 = vector.load %arg5[%c3, %c0_33, %c0_34] : memref<4x256x128xf32, #tpu.memory_space<vmem>>, vector<1x256x128xf32>
    %40 = vector.shape_cast %39 : vector<1x256x128xf32> to vector<256x128xf32>
    %41 = arith.mulf %5, %40 : vector<256x128xf32>
    %42 = arith.addf %4, %41 : vector<256x128xf32>
    %c3_35 = arith.constant 3 : index
    %c0_36 = arith.constant 0 : index
    %c0_37 = arith.constant 0 : index
    %43 = vector.load %arg9[%c3_35, %c0_36, %c0_37] : memref<4x8x128xf32, #tpu.memory_space<vmem>>, vector<1x8x128xf32>
    %44 = vector.shape_cast %43 : vector<1x8x128xf32> to vector<8x128xf32>
    %cst_38 = arith.constant dense<0.000000e+00> : vector<8x128xf32>
    %45 = tpu.matmul %3, %42, %cst_38 {dimension_numbers = #tpu.dot_dimension_numbers<[1], [0], [0], [1], [0, 0, 1, 1], [], []>} : vector<8x256xf32>, vector<256x128xf32>, vector<8x128xf32> -> vector<8x128xf32>
    %46 = arith.addf %44, %45 : vector<8x128xf32>
    %c3_39 = arith.constant 3 : index
    %c0_40 = arith.constant 0 : index
    %c0_41 = arith.constant 0 : index
    %47 = vector.load %arg9[%c3_39, %c0_40, %c0_41] : memref<4x8x128xf32, #tpu.memory_space<vmem>>, vector<1x8x128xf32>
    %48 = vector.shape_cast %47 : vector<1x8x128xf32> to vector<8x128xf32>
    %49 = vector.shape_cast %46 : vector<8x128xf32> to vector<1x8x128xf32>
    tpu.vector_store %arg9[%c3_39, %c0_40, %c0_41], %49 {strides = array<i32>} : memref<4x8x128xf32, #tpu.memory_space<vmem>>, vector<1x8x128xf32>,
    %50 = math.log %5 : vector<256x128xf32>
    %cst_42 = arith.constant -1.16071641 : f32
    %51 = vector.broadcast %cst_42 : f32 to vector<256x128xf32>
    %52 = arith.subf %51, %50 : vector<256x128xf32>
    %53 = arith.mulf %5, %5 : vector<256x128xf32>
    %54 = arith.mulf %4, %4 : vector<256x128xf32>
    %55 = arith.addf %53, %54 : vector<256x128xf32>
    %cst_43 = arith.constant 5.09513187 : f32
    %56 = vector.broadcast %cst_43 : f32 to vector<256x128xf32>
    %57 = arith.mulf %55, %56 : vector<256x128xf32>
    %58 = arith.addf %52, %57 : vector<256x128xf32>
    %cst_44 = arith.constant 5.000000e-01 : f32
    %59 = vector.broadcast %cst_44 : f32 to vector<256x128xf32>
    %60 = arith.subf %58, %59 : vector<256x128xf32>
    %c0_45 = arith.constant 0 : index
    %c0_46 = arith.constant 0 : index
    %c0_47 = arith.constant 0 : index
    %61 = vector.load %arg10[%c0_45, %c0_46, %c0_47] : memref<1x8x128xf32, #tpu.memory_space<vmem>>, vector<1x8x128xf32>
    %62 = vector.shape_cast %60 : vector<256x128xf32> to vector<1x256x128xf32>
    %cst_48 = arith.constant dense<0.000000e+00> : vector<1xf32>
    %63 = vector.multi_reduction <add>, %62, %cst_48 [1, 2] : vector<1x256x128xf32> to vector<1xf32>
    %64 = vector.shape_cast %63 : vector<1xf32> to vector<1x1x1xf32>
    %65 = vector.extract %64[0, 0, 0] : f32 from vector<1x1x1xf32>
    %66 = vector.broadcast %65 : f32 to vector<1x8x128xf32>
    %67 = arith.addf %61, %66 : vector<1x8x128xf32>
    %c0_49 = arith.constant 0 : index
    %c0_50 = arith.constant 0 : index
    %c0_51 = arith.constant 0 : index
    %68 = vector.load %arg10[%c0_49, %c0_50, %c0_51] : memref<1x8x128xf32, #tpu.memory_space<vmem>>, vector<1x8x128xf32>
    tpu.vector_store %arg10[%c0_49, %c0_50, %c0_51], %67 {strides = array<i32>} : memref<1x8x128xf32, #tpu.memory_space<vmem>>, vector<1x8x128xf32>,
    %c0_i32_52 = arith.constant 0 : i32
    %69 = arith.cmpi eq, %arg1, %c0_i32_52 : i32
    %70 = arith.extui %69 : i1 to i32
    %c0_i32_53 = arith.constant 0 : i32
    %71 = arith.cmpi ne, %70, %c0_i32_53 : i32
    scf.if %71 {
      %c0_54 = arith.constant 0 : index
      %c0_55 = arith.constant 0 : index
      %72 = vector.load %arg6[%c0_54, %c0_55] : memref<1x128xf32, #tpu.memory_space<vmem>>, vector<1x128xf32>
      %c0_56 = arith.constant 0 : index
      %c0_57 = arith.constant 0 : index
      %73 = vector.load %arg7[%c0_56, %c0_57] : memref<1x128xf32, #tpu.memory_space<vmem>>, vector<1x128xf32>
      %c0_58 = arith.constant 0 : index
      %c0_59 = arith.constant 0 : index
      %c0_60 = arith.constant 0 : index
      %74 = vector.load %arg9[%c0_58, %c0_59, %c0_60] : memref<4x8x128xf32, #tpu.memory_space<vmem>>, vector<1x8x128xf32>
      %75 = vector.shape_cast %74 : vector<1x8x128xf32> to vector<8x128xf32>
      %c0_61 = arith.constant 0 : index
      %c0_62 = arith.constant 0 : index
      %c0_63 = arith.constant 0 : index
      %76 = vector.load %arg8[%c0_61, %c0_62, %c0_63] : memref<4x1x128xf32, #tpu.memory_space<vmem>>, vector<1x1x128xf32>
      %77 = vector.shape_cast %76 : vector<1x1x128xf32> to vector<1x128xf32>
      %78 = arith.mulf %73, %77 : vector<1x128xf32>
      %79 = arith.addf %72, %78 : vector<1x128xf32>
      %80 = vector.broadcast %79 : vector<1x128xf32> to vector<8x128xf32>
      %81 = arith.addf %75, %80 : vector<8x128xf32>
      %c0_64 = arith.constant 0 : index
      %c0_65 = arith.constant 0 : index
      %c0_66 = arith.constant 0 : index
      %82 = vector.load %arg9[%c0_64, %c0_65, %c0_66] : memref<4x8x128xf32, #tpu.memory_space<vmem>>, vector<1x8x128xf32>
      %83 = vector.shape_cast %82 : vector<1x8x128xf32> to vector<8x128xf32>
      %84 = vector.shape_cast %81 : vector<8x128xf32> to vector<1x8x128xf32>
      tpu.vector_store %arg9[%c0_64, %c0_65, %c0_66], %84 {strides = array<i32>} : memref<4x8x128xf32, #tpu.memory_space<vmem>>, vector<1x8x128xf32>,
      %c1_67 = arith.constant 1 : index
      %c0_68 = arith.constant 0 : index
      %c0_69 = arith.constant 0 : index
      %85 = vector.load %arg9[%c1_67, %c0_68, %c0_69] : memref<4x8x128xf32, #tpu.memory_space<vmem>>, vector<1x8x128xf32>
      %86 = vector.shape_cast %85 : vector<1x8x128xf32> to vector<8x128xf32>
      %c1_70 = arith.constant 1 : index
      %c0_71 = arith.constant 0 : index
      %c0_72 = arith.constant 0 : index
      %87 = vector.load %arg8[%c1_70, %c0_71, %c0_72] : memref<4x1x128xf32, #tpu.memory_space<vmem>>, vector<1x1x128xf32>
      %88 = vector.shape_cast %87 : vector<1x1x128xf32> to vector<1x128xf32>
      %89 = arith.mulf %73, %88 : vector<1x128xf32>
      %90 = arith.addf %72, %89 : vector<1x128xf32>
      %91 = vector.broadcast %90 : vector<1x128xf32> to vector<8x128xf32>
      %92 = arith.addf %86, %91 : vector<8x128xf32>
      %c1_73 = arith.constant 1 : index
      %c0_74 = arith.constant 0 : index
      %c0_75 = arith.constant 0 : index
      %93 = vector.load %arg9[%c1_73, %c0_74, %c0_75] : memref<4x8x128xf32, #tpu.memory_space<vmem>>, vector<1x8x128xf32>
      %94 = vector.shape_cast %93 : vector<1x8x128xf32> to vector<8x128xf32>
      %95 = vector.shape_cast %92 : vector<8x128xf32> to vector<1x8x128xf32>
      tpu.vector_store %arg9[%c1_73, %c0_74, %c0_75], %95 {strides = array<i32>} : memref<4x8x128xf32, #tpu.memory_space<vmem>>, vector<1x8x128xf32>,
      %c2_76 = arith.constant 2 : index
      %c0_77 = arith.constant 0 : index
      %c0_78 = arith.constant 0 : index
      %96 = vector.load %arg9[%c2_76, %c0_77, %c0_78] : memref<4x8x128xf32, #tpu.memory_space<vmem>>, vector<1x8x128xf32>
      %97 = vector.shape_cast %96 : vector<1x8x128xf32> to vector<8x128xf32>
      %c2_79 = arith.constant 2 : index
      %c0_80 = arith.constant 0 : index
      %c0_81 = arith.constant 0 : index
      %98 = vector.load %arg8[%c2_79, %c0_80, %c0_81] : memref<4x1x128xf32, #tpu.memory_space<vmem>>, vector<1x1x128xf32>
      %99 = vector.shape_cast %98 : vector<1x1x128xf32> to vector<1x128xf32>
      %100 = arith.mulf %73, %99 : vector<1x128xf32>
      %101 = arith.addf %72, %100 : vector<1x128xf32>
      %102 = vector.broadcast %101 : vector<1x128xf32> to vector<8x128xf32>
      %103 = arith.addf %97, %102 : vector<8x128xf32>
      %c2_82 = arith.constant 2 : index
      %c0_83 = arith.constant 0 : index
      %c0_84 = arith.constant 0 : index
      %104 = vector.load %arg9[%c2_82, %c0_83, %c0_84] : memref<4x8x128xf32, #tpu.memory_space<vmem>>, vector<1x8x128xf32>
      %105 = vector.shape_cast %104 : vector<1x8x128xf32> to vector<8x128xf32>
      %106 = vector.shape_cast %103 : vector<8x128xf32> to vector<1x8x128xf32>
      tpu.vector_store %arg9[%c2_82, %c0_83, %c0_84], %106 {strides = array<i32>} : memref<4x8x128xf32, #tpu.memory_space<vmem>>, vector<1x8x128xf32>,
      %c3_85 = arith.constant 3 : index
      %c0_86 = arith.constant 0 : index
      %c0_87 = arith.constant 0 : index
      %107 = vector.load %arg9[%c3_85, %c0_86, %c0_87] : memref<4x8x128xf32, #tpu.memory_space<vmem>>, vector<1x8x128xf32>
      %108 = vector.shape_cast %107 : vector<1x8x128xf32> to vector<8x128xf32>
      %c3_88 = arith.constant 3 : index
      %c0_89 = arith.constant 0 : index
      %c0_90 = arith.constant 0 : index
      %109 = vector.load %arg8[%c3_88, %c0_89, %c0_90] : memref<4x1x128xf32, #tpu.memory_space<vmem>>, vector<1x1x128xf32>
      %110 = vector.shape_cast %109 : vector<1x1x128xf32> to vector<1x128xf32>
      %111 = arith.mulf %73, %110 : vector<1x128xf32>
      %112 = arith.addf %72, %111 : vector<1x128xf32>
      %113 = vector.broadcast %112 : vector<1x128xf32> to vector<8x128xf32>
      %114 = arith.addf %108, %113 : vector<8x128xf32>
      %c3_91 = arith.constant 3 : index
      %c0_92 = arith.constant 0 : index
      %c0_93 = arith.constant 0 : index
      %115 = vector.load %arg9[%c3_91, %c0_92, %c0_93] : memref<4x8x128xf32, #tpu.memory_space<vmem>>, vector<1x8x128xf32>
      %116 = vector.shape_cast %115 : vector<1x8x128xf32> to vector<8x128xf32>
      %117 = vector.shape_cast %114 : vector<8x128xf32> to vector<1x8x128xf32>
      tpu.vector_store %arg9[%c3_91, %c0_92, %c0_93], %117 {strides = array<i32>} : memref<4x8x128xf32, #tpu.memory_space<vmem>>, vector<1x8x128xf32>,
      %118 = math.log %73 : vector<1x128xf32>
      %cst_94 = arith.constant -1.16071641 : f32
      %119 = vector.broadcast %cst_94 : f32 to vector<1x128xf32>
      %120 = arith.subf %119, %118 : vector<1x128xf32>
      %121 = arith.mulf %73, %73 : vector<1x128xf32>
      %122 = arith.mulf %72, %72 : vector<1x128xf32>
      %123 = arith.addf %121, %122 : vector<1x128xf32>
      %cst_95 = arith.constant 5.09513187 : f32
      %124 = vector.broadcast %cst_95 : f32 to vector<1x128xf32>
      %125 = arith.mulf %123, %124 : vector<1x128xf32>
      %126 = arith.addf %120, %125 : vector<1x128xf32>
      %cst_96 = arith.constant 5.000000e-01 : f32
      %127 = vector.broadcast %cst_96 : f32 to vector<1x128xf32>
      %128 = arith.subf %126, %127 : vector<1x128xf32>
      %c0_97 = arith.constant 0 : index
      %c0_98 = arith.constant 0 : index
      %c0_99 = arith.constant 0 : index
      %129 = vector.load %arg10[%c0_97, %c0_98, %c0_99] : memref<1x8x128xf32, #tpu.memory_space<vmem>>, vector<1x8x128xf32>
      %130 = vector.shape_cast %128 : vector<1x128xf32> to vector<1x1x128xf32>
      %cst_100 = arith.constant dense<0.000000e+00> : vector<1xf32>
      %131 = vector.multi_reduction <add>, %130, %cst_100 [1, 2] : vector<1x1x128xf32> to vector<1xf32>
      %132 = vector.shape_cast %131 : vector<1xf32> to vector<1x1x1xf32>
      %133 = vector.extract %132[0, 0, 0] : f32 from vector<1x1x1xf32>
      %134 = vector.broadcast %133 : f32 to vector<1x8x128xf32>
      %135 = arith.addf %129, %134 : vector<1x8x128xf32>
      %c0_101 = arith.constant 0 : index
      %c0_102 = arith.constant 0 : index
      %c0_103 = arith.constant 0 : index
      %136 = vector.load %arg10[%c0_101, %c0_102, %c0_103] : memref<1x8x128xf32, #tpu.memory_space<vmem>>, vector<1x8x128xf32>
      tpu.vector_store %arg10[%c0_101, %c0_102, %c0_103], %135 {strides = array<i32>} : memref<1x8x128xf32, #tpu.memory_space<vmem>>, vector<1x8x128xf32>,
    } else {
    }
    return
  }
  func.func @transform_0(%arg0: i32, %arg1: i32) -> (i32, i32) {
    %c0_i32 = arith.constant 0 : i32
    %c0_i32_0 = arith.constant 0 : i32
    return %c0_i32, %arg1 : i32, i32
  }
  func.func @transform_1(%arg0: i32, %arg1: i32) -> (i32, i32) {
    %c0_i32 = arith.constant 0 : i32
    return %arg1, %arg0 : i32, i32
  }
  func.func @transform_2(%arg0: i32, %arg1: i32) -> (i32, i32) {
    %c0_i32 = arith.constant 0 : i32
    return %arg1, %arg0 : i32, i32
  }
  func.func @transform_3(%arg0: i32, %arg1: i32) -> (i32, i32, i32) {
    %c0_i32 = arith.constant 0 : i32
    %c0_i32_0 = arith.constant 0 : i32
    return %c0_i32, %arg1, %arg0 : i32, i32, i32
  }
  func.func @transform_4(%arg0: i32, %arg1: i32) -> (i32, i32) {
    %c0_i32 = arith.constant 0 : i32
    %c0_i32_0 = arith.constant 0 : i32
    return %c0_i32, %arg0 : i32, i32
  }
  func.func @transform_5(%arg0: i32, %arg1: i32) -> (i32, i32) {
    %c0_i32 = arith.constant 0 : i32
    %c0_i32_0 = arith.constant 0 : i32
    return %c0_i32, %arg0 : i32, i32
  }
  func.func @transform_6(%arg0: i32, %arg1: i32) -> (i32, i32, i32) {
    %c0_i32 = arith.constant 0 : i32
    %c0_i32_0 = arith.constant 0 : i32
    %c0_i32_1 = arith.constant 0 : i32
    return %c0_i32, %c0_i32_0, %arg0 : i32, i32, i32
  }
  func.func @transform_7(%arg0: i32, %arg1: i32) -> (i32, i32, i32) {
    %c0_i32 = arith.constant 0 : i32
    %c0_i32_0 = arith.constant 0 : i32
    %c0_i32_1 = arith.constant 0 : i32
    return %c0_i32, %c0_i32_0, %arg0 : i32, i32, i32
  }
  func.func @transform_8(%arg0: i32, %arg1: i32) -> (i32, i32, i32) {
    %c0_i32 = arith.constant 0 : i32
    %c0_i32_0 = arith.constant 0 : i32
    %c0_i32_1 = arith.constant 0 : i32
    return %arg0, %c0_i32, %c0_i32_0 : i32, i32, i32
  }
}

</mosaic_0001>

<bundles_post_ra>
// kernel: tpu_custom_call.1
= control target key start
LH: loop header
LB: loop body
LE: loop exit
PB: predicated region body
PF: predicated region fallthrough
CT: control target
= control target key end

     0   :  { %14 = vsyncpa [#allocation3], 0  ;;  %s2455_s0 = inlined_call_operand.hbm [shape: f32[8,256], index: 0, kind: input, shape index: {}]   ;;  %s2456_s1 = inlined_call_operand.hbm [shape: f32[256,128], index: 1, kind: input, shape index: {}]   ;;  %s2457_s2 = inlined_call_operand.hbm [shape: f32[256,128], index: 2, kind: input, shape index: {}]   ;;  %s2458_s3 = inlined_call_operand.hbm [shape: f32[4,256,128], index: 3, kind: input, shape index: {}]   ;;  %s2459_s4 = inlined_call_operand.vmem [shape: f32[1,128], index: 4, kind: input, shape index: {}]   ;;  %s2460_s5 = inlined_call_operand.vmem [shape: f32[1,128], index: 5, kind: input, shape index: {}]   ;;  %s2461_s6 = inlined_call_operand.vmem [shape: f32[4,1,128], index: 6, kind: input, shape index: {}]   ;;  %s2462_s7 = inlined_call_operand.hbm [shape: f32[4,8,128], index: 7, kind: output, shape index: {0}]   ;;  %s2463_s8 = inlined_call_operand.hbm [shape: f32[1,8,128], index: 8, kind: output, shape index: {1}]  }
   0x1   :  { %15 = vsyncpa [#allocation6], 0 }
   0x2   :  { %16 = vsyncpa [#allocation9], 0 }
   0x3   :  { %17 = vsyncpa [#allocation4], 0 }
   0x4   :  { %18 = vsyncpa [#allocation12], 0  ;;  %s1692_s27 = smov [#allocation5]  }
   0x5   :  { %s34_s28 = sshll.u32 %s1692_s27, 4  ;;  %s35_s28 = int_to_ptr.vmem [resolvable:$true] %s34_s28 }
   0x6   :  { %s1570_s29 = scalar_lea.vmem %s35_s28, 4096  ;;  %p1575_p1 = scmp.lt.s32.totalorder %s35_s28, %s35_s28 }
   0x7   :  { %p1571_p0 = scmp.ne.s32.totalorder %s35_s28, %s1570_s29  ;;  %p1576_p2 = scmp.lt.s32.totalorder %s1570_s29, %s1570_s29 }
   0x9   :  { %p1577_p3 = por %p1576_p2, %p1575_p1 }
   0xb   :  { %p1578_p4 = pnand %p1577_p3, %p1571_p0 }
   0xd   :  { %1581 = shalt.err (!%p1578_p4)
}
   0xe   :  { %s1693_s30 = smov 128   ;;  %s1694_s9 = smov 8  }
   0xf   :  { %40 = dma.hbm_to_vmem [thread:$0]  %s2456_s1, 4096, %s35_s28, [#allocation6], %s1693_s30, %s1693_s30, %s1694_s9  }
  0x10   :  { %s1695_s12 = smov [#allocation2]   ;;  %s1696_s14 = smov [#allocation7]  }
  0x11   :  { %s25_s13 = sshll.u32 %s1695_s12, 4  ;;  %s46_s15 = sshll.u32 %s1696_s14, 4  ;;  %s26_s13 = int_to_ptr.vmem [resolvable:$true] %s25_s13  ;;  %s47_s15 = int_to_ptr.vmem [resolvable:$true] %s46_s15 }
  0x12   :  { %s1590_s16 = scalar_lea.vmem %s26_s13, 256  ;;  %p1595_p6 = scmp.lt.s32.totalorder %s26_s13, %s26_s13 }
  0x13   :  { %p1591_p5 = scmp.ne.s32.totalorder %s26_s13, %s1590_s16  ;;  %p1596_p7 = scmp.lt.s32.totalorder %s1590_s16, %s1590_s16 }
  0x15   :  { %p1597_p8 = por %p1596_p7, %p1595_p6 }
  0x17   :  { %p1598_p9 = pnand %p1597_p8, %p1591_p5 }
  0x19   :  { %1601 = shalt.err (!%p1598_p9)
}
  0x1a   :  { %28 = dma.hbm_to_vmem [thread:$0]  %s2455_s0, 256, %s26_s13, [#allocation3]  }
  0x1b   :  { %s1610_s19 = scalar_lea.vmem %s47_s15, 4096  ;;  %p1615_p11 = scmp.lt.s32.totalorder %s47_s15, %s47_s15 }
  0x1c   :  { %p1611_p10 = scmp.ne.s32.totalorder %s47_s15, %s1610_s19  ;;  %p1616_p12 = scmp.lt.s32.totalorder %s1610_s19, %s1610_s19 }
  0x1e   :  { %p1617_p13 = por %p1616_p12, %p1615_p11 }
  0x20   :  { %p1618_p0 = pnand %p1617_p13, %p1611_p10 }
  0x22   :  { %1621 = shalt.err (!%p1618_p0)
}
  0x23   :  { %52 = dma.hbm_to_vmem [thread:$0]  %s2457_s2, 4096, %s47_s15, [#allocation6], %s1693_s30, %s1693_s30, %s1694_s9  }
  0x24   :  { %s1697_s21 = smov [#allocation8]  }
  0x25   :  { %s58_s22 = sshll.u32 %s1697_s21, 4  ;;  %s59_s22 = int_to_ptr.vmem [resolvable:$true] %s58_s22 }
  0x26   :  { %s1630_s23 = scalar_lea.vmem %s59_s22, 16384  ;;  %p1635_p2 = scmp.lt.s32.totalorder %s59_s22, %s59_s22 }
  0x27   :  { %p1631_p1 = scmp.ne.s32.totalorder %s59_s22, %s1630_s23  ;;  %p1636_p3 = scmp.lt.s32.totalorder %s1630_s23, %s1630_s23 }
  0x29   :  { %p1637_p4 = por %p1636_p3, %p1635_p2 }
  0x2b   :  { %p1638_p5 = pnand %p1637_p4, %p1631_p1 }
  0x2d   :  { %1641 = shalt.err (!%p1638_p5)
}
  0x2e   :  { %64 = dma.hbm_to_vmem [thread:$0]  %s2458_s3, 16384, %s59_s22, [#allocation9], %s1693_s30, %s1693_s30, %s1694_s9  }
  0x2f   :  { %1682 = dma.done.wait [#allocation3], 256  }
  0x30   :  { %1683 = vsyncadd [#allocation3], 4294967040 }
  0x31   :  { %1684 = dma.done.wait [#allocation6], 8192  }
  0x32   :  { %1685 = vsyncadd [#allocation6], 4294959104 }
  0x33   :  { %1686 = dma.done.wait [#allocation9], 16384  }
  0x34   :  { %1687 = vsyncadd [#allocation9], 4294950912  ;;  %v1766_v0 = vld [vmem:[#allocation5 + $0xf8] sm:$0xff]  ;;  %v1776_v10 = vld [vmem:[#allocation5 + $0xf0] sm:$0xff]  ;;  %vm1238_vm0 = vcmask 1040384  }
  0x35   :  { %v1768_v1 = vld [vmem:[#allocation7 + $0xf8] sm:$0xff]  ;;  %v1781_v14 = vld [vmem:[#allocation7 + $0xf0] sm:$0xff]  ;;  %v1793_v27 = vld [vmem:[#allocation5 + $0xe8] sm:$0xff] }
  0x36   :  { %v189_v2 = vld [vmem:[#allocation8 + $0xf8] sm:$0xff]  ;;  %v188_v15 = vld [vmem:[#allocation8 + $0xf0] sm:$0xff]  ;;  %v1795_v28 = vld [vmem:[#allocation7 + $0xe8] sm:$0xff] }
  0x37   :  { %v221_v3 = vmul.f32 %v189_v2, %v1768_v1  ;;  %v359_v4 = vld [vmem:[#allocation8 + $0x1f8] sm:$0xff]  ;;  %v358_v16 = vld [vmem:[#allocation8 + $0x1f0] sm:$0xff]  ;;  %v220_v18 = vmul.f32 %v188_v15, %v1781_v14  ;;  %v187_v31 = vld [vmem:[#allocation8 + $0xe8] sm:$0xff] }
  0x38   :  { %v1771_v5 = vld [vmem:[#allocation5 + $0x78] sm:$0xff]  ;;  %v391_v7 = vmul.f32 %v359_v4, %v1768_v1  ;;  %v390_v19 = vmul.f32 %v358_v16, %v1781_v14  ;;  %v1786_v20 = vld [vmem:[#allocation5 + $0x70] sm:$0xff]  ;;  %v357_v32 = vld [vmem:[#allocation8 + $0x1e8] sm:$0xff]  ;;  %v219_v39 = vmul.f32 %v187_v31, %v1795_v28 }
  0x39   :  { %v1773_v6 = vld [vmem:[#allocation7 + $0x78] sm:$0xff]  ;;  %v253_v11 = vadd.f32 %v221_v3, %v1766_v0  ;;  %v1788_v21 = vld [vmem:[#allocation7 + $0x70] sm:$0xff]  ;;  %v252_v29 = vadd.f32 %v220_v18, %v1776_v10  ;;  %v1799_v33 = vld [vmem:[#allocation5 + $0x68] sm:$0xff]  ;;  %v389_v40 = vmul.f32 %v357_v32, %v1795_v28 }
  0x3a   :  { %v173_v8 = vld [vmem:[#allocation8 + $0x78] sm:$0xff]  ;;  %v423_v17 = vadd.f32 %v391_v7, %v1766_v0  ;;  %v172_v22 = vld [vmem:[#allocation8 + $0x70] sm:$0xff]  ;;  %v422_v30 = vadd.f32 %v390_v19, %v1776_v10  ;;  %v1803_v36 = vld [vmem:[#allocation7 + $0x68] sm:$0xff]  ;;  %v251_v48 = vadd.f32 %v219_v39, %v1793_v27  ;;  %1474 = vlog2.f32 %v1788_v21 }
  0x3b   :  { %v343_v9 = vld [vmem:[#allocation8 + $0x178] sm:$0xff]  ;;  %v205_v12 = vmul.f32 %v173_v8, %v1773_v6  ;;  %1321 = vmatprep.subr.mxu0 %v253_v11  ;;  %v204_v25 = vmul.f32 %v172_v22, %v1788_v21  ;;  %v342_v26 = vld [vmem:[#allocation8 + $0x170] sm:$0xff]  ;;  %v171_v37 = vld [vmem:[#allocation8 + $0x68] sm:$0xff]  ;;  %v421_v49 = vadd.f32 %v389_v40, %v1793_v27 }
  0x3c   :  { %v375_v13 = vmul.f32 %v343_v9, %v1773_v6  ;;  %1356 = vmatprep.subr.mxu1 %v423_v17  ;;  %v374_v35 = vmul.f32 %v342_v26, %v1788_v21  ;;  %v341_v38 = vld [vmem:[#allocation8 + $0x168] sm:$0xff]  ;;  %v203_v41 = vmul.f32 %v171_v37, %v1803_v36  ;;  %v1808_v42 = vld [vmem:[#allocation7 + $0xe0] sm:$0xff]  ;;  %v1823_v57 = vld [vmem:[#allocation7 + $0xd8] sm:$0xff] }
  0x3d   :  { %v237_v23 = vadd.f32 %v205_v12, %v1771_v5  ;;  %v236_v34 = vadd.f32 %v204_v25, %v1786_v20  ;;  %v186_v43 = vld [vmem:[#allocation8 + $0xe0] sm:$0xff]  ;;  %v373_v51 = vmul.f32 %v341_v38, %v1803_v36  ;;  %v185_v58 = vld [vmem:[#allocation8 + $0xd8] sm:$0xff]  ;;  %v1840_v16 = vld [vmem:[#allocation7 + $0xd0] sm:$0xff] }
  0x3e   :  { %v407_v24 = vadd.f32 %v375_v13, %v1771_v5  ;;  %v406_v44 = vadd.f32 %v374_v35, %v1786_v20  ;;  %v1811_v45 = vld [vmem:[#allocation5 + $0xe0] sm:$0xff]  ;;  %v235_v50 = vadd.f32 %v203_v41, %v1799_v33  ;;  %v218_v55 = vmul.f32 %v186_v43, %v1808_v42  ;;  %v355_v59 = vld [vmem:[#allocation8 + $0x1d8] sm:$0xff]  ;;  %v184_v17 = vld [vmem:[#allocation8 + $0xd0] sm:$0xff] }
  0x3f   :  { %1322 = vmatpush3.msra.mxu0 %v237_v23  ;;  %v356_v46 = vld [vmem:[#allocation8 + $0x1e0] sm:$0xff]  ;;  %v405_v60 = vadd.f32 %v373_v51, %v1799_v33  ;;  %v169_v62 = vld [vmem:[#allocation8 + $0x58] sm:$0xff]  ;;  %v217_v8 = vmul.f32 %v185_v58, %v1823_v57  ;;  %v387_v9 = vmul.f32 %v355_v59, %v1823_v57  ;;  %v354_v18 = vld [vmem:[#allocation8 + $0x1d0] sm:$0xff] }
  0x40   :  { %1357 = vmatpush3.msra.mxu1 %v407_v24  ;;  %1323 = vmatprep.subr.mxu0 %v252_v29  ;;  %v1813_v47 = vld [vmem:[#allocation5 + $0x60] sm:$0xff]  ;;  %v388_v56 = vmul.f32 %v356_v46, %v1808_v42  ;;  %v250_v63 = vadd.f32 %v218_v55, %v1811_v45  ;;  %v1829_v3 = vld [vmem:[#allocation5 + $0xd8] sm:$0xff]  ;;  %v168_v24 = vld [vmem:[#allocation8 + $0x50] sm:$0xff]  ;;  %v386_v31 = vmul.f32 %v354_v18, %v1840_v16 }
  0x41   :  { %1358 = vmatprep.subr.mxu1 %v422_v30  ;;  %1324 = vmatpush3.msra.mxu0 %v236_v34  ;;  %v1819_v52 = vld [vmem:[#allocation7 + $0x60] sm:$0xff]  ;;  %v1835_v11 = vld [vmem:[#allocation5 + $0x58] sm:$0xff]  ;;  %v249_v22 = vadd.f32 %v217_v8, %v1829_v3  ;;  %v419_v23 = vadd.f32 %v387_v9, %v1829_v3  ;;  %v1847_v29 = vld [vmem:[#allocation5 + $0xd0] sm:$0xff]  ;;  %v216_v30 = vmul.f32 %v184_v17, %v1840_v16 }
  0x42   :  { %v170_v53 = vld [vmem:[#allocation8 + $0x60] sm:$0xff]  ;;  %1359 = vmatpush3.msra.mxu1 %v406_v44  ;;  %1325 = vmatprep.subr.mxu0 %v251_v48  ;;  %v420_v2 = vadd.f32 %v388_v56, %v1811_v45  ;;  %v1837_v12 = vld [vmem:[#allocation7 + $0x58] sm:$0xff]  ;;  %v1851_v32 = vld [vmem:[#allocation7 + $0x50] sm:$0xff]  ;;  %v418_v40 = vadd.f32 %v386_v31, %v1847_v29 }
  0x43   :  { %v340_v54 = vld [vmem:[#allocation8 + $0x160] sm:$0xff]  ;;  %1360 = vmatprep.subr.mxu1 %v421_v49  ;;  %v202_v61 = vmul.f32 %v170_v53, %v1819_v52  ;;  %1326 = vmatpush3.msra.mxu0 %v235_v50  ;;  %v339_v13 = vld [vmem:[#allocation8 + $0x158] sm:$0xff]  ;;  %v201_v15 = vmul.f32 %v169_v62, %v1837_v12  ;;  %v1854_v35 = vld [vmem:[#allocation5 + $0x50] sm:$0xff]  ;;  %v200_v37 = vmul.f32 %v168_v24, %v1851_v32 }
  0x44   :  { %1361 = vmatpush3.msra.mxu1 %v405_v60  ;;  %v372_v7 = vmul.f32 %v340_v54, %v1819_v52  ;;  %1327 = vmatprep.subr.mxu0 %v250_v63  ;;  %v371_v26 = vmul.f32 %v339_v13, %v1837_v12  ;;  %2534 = vst [vmem:[#allocation18_spill] sm:$0xff] %v1854_v35  ;;  %v338_v38 = vld [vmem:[#allocation8 + $0x150] sm:$0xff]  ;;  %v1859_v41 = vld [vmem:[#allocation7 + $0xc8] sm:$0xff]  ;;  %v1875_v62 = vld [vmem:[#allocation7 + $0xc0] sm:$0xff] }
  0x45   :  { %v234_v4 = vadd.f32 %v202_v61, %v1813_v47  ;;  %1362 = vmatprep.subr.mxu1 %v420_v2  ;;  %v233_v25 = vadd.f32 %v201_v15, %v1835_v11  ;;  %v248_v39 = vadd.f32 %v216_v30, %v1847_v29  ;;  %v183_v43 = vld [vmem:[#allocation8 + $0xc8] sm:$0xff]  ;;  %v232_v46 = vadd.f32 %v200_v37, %v1854_v35  ;;  %v182_v63 = vld [vmem:[#allocation8 + $0xc0] sm:$0xff]  ;;  %v1888_v24 = vld [vmem:[#allocation7 + $0xb8] sm:$0xff] }
  0x46   :  { %v404_v19 = vadd.f32 %v372_v7, %v1813_v47  ;;  %v403_v34 = vadd.f32 %v371_v26, %v1835_v11  ;;  %v353_v44 = vld [vmem:[#allocation8 + $0x1c8] sm:$0xff]  ;;  %v370_v49 = vmul.f32 %v338_v38, %v1851_v32  ;;  %v215_v51 = vmul.f32 %v183_v43, %v1859_v41  ;;  %2537 = vst [vmem:[#allocation21_spill] sm:$0xff] %v1875_v62  ;;  %v1879_v7 = vld [vmem:[#allocation5 + $0xc0] sm:$0xff]  ;;  %v351_v37 = vld [vmem:[#allocation8 + $0x1b8] sm:$0xff] }
  0x47   :  { %1328 = vmatpush3.msra.mxu0 %v234_v4  ;;  %v167_v48 = vld [vmem:[#allocation8 + $0x48] sm:$0xff]  ;;  %v385_v53 = vmul.f32 %v353_v44, %v1859_v41  ;;  %2538 = vst [vmem:[#allocation22_spill] sm:$0xff] %v1879_v7  ;;  %v352_v8 = vld [vmem:[#allocation8 + $0x1c0] sm:$0xff]  ;;  %v214_v13 = vmul.f32 %v182_v63, %v1875_v62  ;;  %2540 = vst [vmem:[#allocation24_spill] sm:$0xff] %v1888_v24 }
  0x48   :  { %1363 = vmatpush3.msra.mxu1 %v404_v19  ;;  %1329 = vmatprep.subr.mxu0 %v249_v22  ;;  %v1863_v50 = vld [vmem:[#allocation5 + $0xc8] sm:$0xff]  ;;  %v402_v55 = vadd.f32 %v370_v49, %v1854_v35  ;;  %v166_v9 = vld [vmem:[#allocation8 + $0x40] sm:$0xff]  ;;  %v384_v19 = vmul.f32 %v352_v8, %v1875_v62  ;;  %v335_v49 = vld [vmem:[#allocation8 + $0x138] sm:$0xff] }
  0x49   :  { %1364 = vmatprep.subr.mxu1 %v419_v23  ;;  %1330 = vmatpush3.msra.mxu0 %v233_v25  ;;  %2535 = vst [vmem:[#allocation19_spill] sm:$0xff] %v1863_v50  ;;  %v1867_v54 = vld [vmem:[#allocation7 + $0x48] sm:$0xff]  ;;  %v247_v59 = vadd.f32 %v215_v51, %v1863_v50  ;;  %v417_v60 = vadd.f32 %v385_v53, %v1863_v50  ;;  %v1883_v17 = vld [vmem:[#allocation7 + $0x40] sm:$0xff]  ;;  %v181_v25 = vld [vmem:[#allocation8 + $0xb8] sm:$0xff] }
  0x4a   :  { %1365 = vmatpush3.msra.mxu1 %v403_v34  ;;  %1331 = vmatprep.subr.mxu0 %v248_v39  ;;  %v199_v56 = vmul.f32 %v167_v48, %v1867_v54  ;;  %v337_v58 = vld [vmem:[#allocation8 + $0x148] sm:$0xff]  ;;  %2539 = vst [vmem:[#allocation23_spill] sm:$0xff] %v1883_v17  ;;  %v246_v18 = vadd.f32 %v214_v13, %v1879_v7  ;;  %v336_v23 = vld [vmem:[#allocation8 + $0x140] sm:$0xff]  ;;  %v1894_v34 = vld [vmem:[#allocation5 + $0xb8] sm:$0xff]  ;;  %1476 = vlog2.f32 %v1867_v54 }
  0x4b   :  { %1366 = vmatprep.subr.mxu1 %v418_v40  ;;  %1332 = vmatpush3.msra.mxu0 %v232_v46  ;;  %v1873_v61 = vld [vmem:[#allocation5 + $0x48] sm:$0xff]  ;;  %v369_v4 = vmul.f32 %v337_v58, %v1867_v54  ;;  %v198_v22 = vmul.f32 %v166_v9, %v1883_v17  ;;  %v1890_v26 = vld [vmem:[#allocation5 + $0x40] sm:$0xff]  ;;  %v416_v30 = vadd.f32 %v384_v19, %v1879_v7  ;;  %v165_v40 = vld [vmem:[#allocation8 + $0x38] sm:$0xff]  ;;  %1478 = vlog2.f32 %v1883_v17 }
  0x4c   :  { %2536 = vst [vmem:[#allocation20_spill] sm:$0xff] %v1873_v61  ;;  %1367 = vmatpush3.msra.mxu1 %v402_v55  ;;  %v231_v2 = vadd.f32 %v199_v56, %v1873_v61  ;;  %1333 = vmatprep.subr.mxu0 %v247_v59  ;;  %2541 = vst [vmem:[#allocation25_spill] sm:$0xff] %v1890_v26  ;;  %v368_v38 = vmul.f32 %v336_v23, %v1883_v17  ;;  %v1901_v48 = vld [vmem:[#allocation7 + $0x38] sm:$0xff]  ;;  %v1904_v53 = vld [vmem:[#allocation7 + $0xb0] sm:$0xff]  ;;  %1480 = vlog2.f32 %v1773_v6 }
  0x4d   :  { %1368 = vmatprep.subr.mxu1 %v417_v60  ;;  %v401_v15 = vadd.f32 %v369_v4, %v1873_v61  ;;  %v230_v31 = vadd.f32 %v198_v22, %v1890_v26  ;;  %2542 = vst [vmem:[#allocation26_spill] sm:$0xff] %v1894_v34  ;;  %v213_v39 = vmul.f32 %v181_v25, %v1888_v24  ;;  %2543 = vst [vmem:[#allocation27_spill] sm:$0xff] %v1901_v48  ;;  %v180_v55 = vld [vmem:[#allocation8 + $0xb0] sm:$0xff]  ;;  %v1912_v60 = vld [vmem:[#allocation5 + $0x38] sm:$0xff] }
  0x4e   :  { %1334 = vmatpush3.msra.mxu0 %v231_v2  ;;  %v400_v43 = vadd.f32 %v368_v38, %v1890_v26  ;;  %v383_v46 = vmul.f32 %v351_v37, %v1888_v24  ;;  %v197_v51 = vmul.f32 %v165_v40, %v1901_v48  ;;  %2544 = vst [vmem:[#allocation28_spill] sm:$0xff] %v1904_v53  ;;  %2545 = vst [vmem:[#allocation29_spill] sm:$0xff] %v1912_v60  ;;  %v1916_v4 = vld [vmem:[#allocation5 + $0xb0] sm:$0xff]  ;;  %v1935_v40 = vld [vmem:[#allocation7 + $0xa8] sm:$0xff] }
  0x4f   :  { %1369 = vmatpush3.msra.mxu1 %v401_v15  ;;  %1335 = vmatprep.subr.mxu0 %v246_v18  ;;  %v245_v44 = vadd.f32 %v213_v39, %v1894_v34  ;;  %v950_v56 = vmul.f32 %v1788_v21, %v1788_v21  ;;  %v982_v58 = vmul.f32 %v1786_v20, %v1786_v20  ;;  %v350_v9 = vld [vmem:[#allocation8 + $0x1b0] sm:$0xff]  ;;  %1482 = vlog2.f32 %v1803_v36  ;;  %v2018_v62 = vld [vmem:[#allocation5 + $0x98] sm:$0xff] }
  0x50   :  { %1370 = vmatprep.subr.mxu1 %v416_v30  ;;  %1336 = vmatpush3.msra.mxu0 %v230_v31  ;;  %v415_v59 = vadd.f32 %v383_v46, %v1894_v34  ;;  %v229_v63 = vadd.f32 %v197_v51, %v1912_v60  ;;  %v367_v2 = vmul.f32 %v335_v49, %v1901_v48  ;;  %v164_v13 = vld [vmem:[#allocation8 + $0x30] sm:$0xff]  ;;  %1484 = vlog2.f32 %v1819_v52 }
  0x51   :  { %1371 = vmatpush3.msra.mxu1 %v400_v43  ;;  %1337 = vmatprep.subr.mxu0 %v245_v44  ;;  %2546 = vst [vmem:[#allocation30_spill] sm:$0xff] %v1916_v4  ;;  %v212_v8 = vmul.f32 %v180_v55, %v1904_v53  ;;  %v951_v18 = vmul.f32 %v1773_v6, %v1773_v6  ;;  %v1927_v25 = vld [vmem:[#allocation7 + $0x30] sm:$0xff]  ;;  %2548 = vst [vmem:[#allocation32_spill] sm:$0xff] %v1935_v40  ;;  %v179_v43 = vld [vmem:[#allocation8 + $0xa8] sm:$0xff]  ;;  %1486 = vlog2.f32 %v1837_v12 }
  0x52   :  { %1372 = vmatprep.subr.mxu1 %v415_v59  ;;  %1338 = vmatpush3.msra.mxu0 %v229_v63  ;;  %v399_v15 = vadd.f32 %v367_v2, %v1912_v60  ;;  %v983_v19 = vmul.f32 %v1771_v5, %v1771_v5  ;;  %v1014_v22 = vadd.f32 %v982_v58, %v950_v56  ;;  %v334_v30 = vld [vmem:[#allocation8 + $0x130] sm:$0xff]  ;;  %v1947_v58 = vld [vmem:[#allocation5 + $0xa8] sm:$0xff] }
  0x53   :  { %v244_v23 = vadd.f32 %v212_v8, %v1916_v4  ;;  %2547 = vst [vmem:[#allocation31_spill] sm:$0xff] %v1927_v25  ;;  %v949_v31 = vmul.f32 %v1803_v36, %v1803_v36  ;;  %v981_v37 = vmul.f32 %v1799_v33, %v1799_v33  ;;  %v382_v38 = vmul.f32 %v350_v9, %v1904_v53  ;;  %v1941_v49 = vld [vmem:[#allocation5 + $0x30] sm:$0xff]  ;;  %v349_v59 = vld [vmem:[#allocation8 + $0x1a8] sm:$0xff]  ;;  %v1953_v9 = vld [vmem:[#allocation2 + $0x8] sm:$0xff] }
  0x54   :  { %1373 = vmatpush3.msra.mxu1 %v399_v15  ;;  %v196_v39 = vmul.f32 %v164_v13, %v1927_v25  ;;  %v948_v44 = vmul.f32 %v1819_v52, %v1819_v52  ;;  %v980_v46 = vmul.f32 %v1813_v47, %v1813_v47  ;;  %2549 = vst [vmem:[#allocation33_spill] sm:$0xff] %v1941_v49  ;;  %2550 = vst [vmem:[#allocation34_spill] sm:$0xff] %v1947_v58  ;;  %v163_v8 = vld [vmem:[#allocation8 + $0x28] sm:$0xff] }
  0x55   :  { %1339 = vmatprep.subr.mxu0 %v244_v23  ;;  %v414_v51 = vadd.f32 %v382_v38, %v1916_v4  ;;  %v366_v56 = vmul.f32 %v334_v30, %v1927_v25  ;;  %v1949_v63 = vadd.f32 %v983_v19, %v951_v18  ;;  %v211_v2 = vmul.f32 %v179_v43, %v1935_v40  ;;  %v333_v30 = vld [vmem:[#allocation8 + $0x128] sm:$0xff]  ;;  %v178_v18 = vld [vmem:[#allocation8 + $0xa0] sm:$0xff] }
  0x56   :  { %v228_v55 = vadd.f32 %v196_v39, %v1941_v49  ;;  %v1955_v13 = vmul.f32 5.095132, %v1014_v22  ;;  %v1957_v15 = vadd.f32 %v981_v37, %v949_v31  ;;  %v1961_v19 = vadd.f32 %v980_v46, %v948_v44  ;;  %v1966_v22 = vld [vmem:[#allocation7 + $0x28] sm:$0xff]  ;;  %v1968_v31 = vld [vmem:[#allocation7 + $0xa0] sm:$0xff]  ;;  %319 = vmatprep.mubr.f32.mxu0 %v1953_v9  ;;  %490 = vmatprep.mubr.f32.mxu1 %v1953_v9 }
  0x57   :  { %2551 = vst [vmem:[#allocation35_spill] sm:$0xff] %v1949_v63  ;;  %1374 = vmatprep.subr.mxu1 %v414_v51  ;;  %v398_v23 = vadd.f32 %v366_v56, %v1941_v49  ;;  %v243_v38 = vadd.f32 %v211_v2, %v1947_v58  ;;  %v381_v39 = vmul.f32 %v349_v59, %v1935_v40  ;;  %2555 = vst [vmem:[#allocation39_spill] sm:$0xff] %v1966_v22  ;;  %v1979_v51 = vld [vmem:[#allocation5 + $0xa0] sm:$0xff]  ;;  %v1984_v59 = vld [vmem:[#allocation5 + $0x28] sm:$0xff] }
  0x58   :  { %2552 = vst [vmem:[#allocation36_spill] sm:$0xff] %v1955_v13  ;;  %2553 = vst [vmem:[#allocation37_spill] sm:$0xff] %v1957_v15  ;;  %1340 = vmatpush3.msra.mxu0 %v228_v55  ;;  %v945_v37 = vmul.f32 %v1867_v54, %v1867_v54  ;;  %v977_v43 = vmul.f32 %v1873_v61, %v1873_v61  ;;  %v944_v44 = vmul.f32 %v1883_v17, %v1883_v17  ;;  %v348_v63 = vld [vmem:[#allocation8 + $0x1a0] sm:$0xff]  ;;  %v1475_v15 = vpop.eup %1474  ;;  %v2055_v61 = vld [vmem:[#allocation5 + $0x18] sm:$0xff] }
  0x59   :  { %2554 = vst [vmem:[#allocation38_spill] sm:$0xff] %v1961_v19  ;;  %2556 = vst [vmem:[#allocation40_spill] sm:$0xff] %v1968_v31  ;;  %1375 = vmatpush3.msra.mxu1 %v398_v23  ;;  %v195_v46 = vmul.f32 %v163_v8, %v1966_v22  ;;  %v976_v55 = vmul.f32 %v1890_v26, %v1890_v26  ;;  %1341 = vmatprep.subr.mxu0 %v243_v38  ;;  %v162_v19 = vld [vmem:[#allocation8 + $0x20] sm:$0xff]  ;;  %1488 = vlog2.f32 %v1968_v31  ;;  %v1477_v4 = vpop.eup %1476  ;;  %v2006_v26 = vld [vmem:[#allocation7 + $0x98] sm:$0xff] }
  0x5a   :  { %2557 = vst [vmem:[#allocation41_spill] sm:$0xff] %v1979_v51  ;;  %v413_v56 = vadd.f32 %v381_v39, %v1947_v58  ;;  %2558 = vst [vmem:[#allocation42_spill] sm:$0xff] %v1984_v59  ;;  %v365_v2 = vmul.f32 %v333_v30, %v1966_v22  ;;  %v210_v13 = vmul.f32 %v178_v18, %v1968_v31  ;;  %1490 = vlog2.f32 %v1851_v32  ;;  %v1999_v58 = vld [vmem:[#allocation7 + $0x20] sm:$0xff] }
  0x5b   :  { %v947_v8 = vmul.f32 %v1837_v12, %v1837_v12  ;;  %v227_v23 = vadd.f32 %v195_v46, %v1984_v59  ;;  %v956_v38 = vmul.f32 %v1968_v31, %v1968_v31  ;;  %v979_v39 = vmul.f32 %v1835_v11, %v1835_v11  ;;  %2559 = vst [vmem:[#allocation43_spill] sm:$0xff] %v1999_v58  ;;  %v332_v40 = vld [vmem:[#allocation8 + $0x120] sm:$0xff] }
  0x5c   :  { %1376 = vmatprep.subr.mxu1 %v413_v56  ;;  %v397_v30 = vadd.f32 %v365_v2, %v1984_v59  ;;  %v242_v18 = vadd.f32 %v210_v13, %v1979_v51  ;;  %1492 = vlog2.f32 %v1927_v25  ;;  %v988_v46 = vmul.f32 %v1979_v51, %v1979_v51  ;;  %2560 = vst [vmem:[#allocation44_spill] sm:$0xff] %v2006_v26  ;;  %v177_v56 = vld [vmem:[#allocation8 + $0x98] sm:$0xff]  ;;  %v1479_v2 = vpop.eup %1478 }
  0x5d   :  { %1342 = vmatpush3.msra.mxu0 %v227_v23  ;;  %v380_v53 = vmul.f32 %v348_v63, %v1968_v31  ;;  %v194_v34 = vmul.f32 %v162_v19, %v1999_v58  ;;  %v2008_v24 = vmul.f32 0.6931472, %v1475_v15  ;;  %v1009_v13 = vadd.f32 %v977_v43, %v945_v37  ;;  %v2011_v23 = vld [vmem:[#allocation5 + $0x20] sm:$0xff]  ;;  %2563 = vst [vmem:[#allocation47_spill] sm:$0xff] %v2018_v62 }
  0x5e   :  { %v1008_v7 = vadd.f32 %v976_v55, %v944_v44  ;;  %1494 = vlog2.f32 %v1966_v22  ;;  %1377 = vmatpush3.msra.mxu1 %v397_v30  ;;  %1343 = vmatprep.subr.mxu0 %v242_v18  ;;  %2562 = vst [vmem:[#allocation46_spill] sm:$0xff] %v2011_v23  ;;  %v2013_v17 = vadd.f32 %v988_v46, %v956_v38  ;;  %v347_v44 = vld [vmem:[#allocation8 + $0x198] sm:$0xff]  ;;  %v2028_v38 = vmul.f32 0.6931472, %v1477_v4 }
  0x5f   :  { %2561 = vst [vmem:[#allocation45_spill] sm:$0xff] %v2008_v24  ;;  %v412_v63 = vadd.f32 %v380_v53, %v1979_v51  ;;  %v226_v19 = vadd.f32 %v194_v34, %v2011_v23  ;;  %v364_v31 = vmul.f32 %v332_v40, %v1999_v58  ;;  %v2020_v15 = vadd.f32 %v979_v39, %v947_v8  ;;  %v161_v55 = vld [vmem:[#allocation8 + $0x18] sm:$0xff]  ;;  %v2035_v39 = vpop.eup %1480 }
  0x60   :  { %v2024_v37 = vmul.f32 %v1851_v32, %v1851_v32  ;;  %v209_v43 = vmul.f32 %v177_v56, %v2006_v26  ;;  %1496 = vlog2.f32 %v2006_v26  ;;  %v2030_v53 = vmul.f32 0.6931472, %v1479_v2  ;;  %v331_v8 = vld [vmem:[#allocation8 + $0x118] sm:$0xff]  ;;  %2565 = vst [vmem:[#allocation49_spill] sm:$0xff] %v2035_v39  ;;  %v2045_v56 = vpop.eup %1482  ;;  %2569 = vst [vmem:[#allocation53_spill] sm:$0xff] %v2055_v61 }
  0x61   :  { %2564 = vst [vmem:[#allocation48_spill] sm:$0xff] %v2020_v15  ;;  %1378 = vmatprep.subr.mxu1 %v412_v63  ;;  %1344 = vmatpush3.msra.mxu0 %v226_v19  ;;  %v396_v34 = vadd.f32 %v364_v31, %v2011_v23  ;;  %v955_v40 = vmul.f32 %v2006_v26, %v2006_v26  ;;  %1498 = vlog2.f32 %v1999_v58  ;;  %v2043_v46 = vld [vmem:[#allocation7 + $0x18] sm:$0xff]  ;;  %2567 = vst [vmem:[#allocation51_spill] sm:$0xff] %v2045_v56  ;;  %v176_v15 = vld [vmem:[#allocation8 + $0x90] sm:$0xff]  ;;  %v2049_v24 = vpop.eup %1484 }
  0x62   :  { %v978_v30 = vmul.f32 %v1854_v35, %v1854_v35  ;;  %v241_v4 = vadd.f32 %v209_v43, %v2018_v62  ;;  %v987_v18 = vmul.f32 %v2018_v62, %v2018_v62  ;;  %2566 = vst [vmem:[#allocation50_spill] sm:$0xff] %v2043_v46  ;;  %v1041_v31 = vmul.f32 5.095132, %v1009_v13  ;;  %2568 = vst [vmem:[#allocation52_spill] sm:$0xff] %v2049_v24  ;;  %v2058_v13 = vld [vmem:[#allocation7 + $0x90] sm:$0xff] }
  0x63   :  { %v1040_v2 = vmul.f32 5.095132, %v1008_v7  ;;  %1379 = vmatpush3.msra.mxu1 %v396_v34  ;;  %v379_v63 = vmul.f32 %v347_v44, %v2006_v26  ;;  %v193_v19 = vmul.f32 %v161_v55, %v2043_v46  ;;  %v943_v43 = vmul.f32 %v1901_v48, %v1901_v48  ;;  %2570 = vst [vmem:[#allocation54_spill] sm:$0xff] %v2058_v13  ;;  %v2060_v44 = vpop.eup %1486  ;;  %v2066_v26 = vld [vmem:[#allocation5 + $0x90] sm:$0xff] }
  0x64   :  { %v975_v39 = vmul.f32 %v1912_v60, %v1912_v60  ;;  %1345 = vmatprep.subr.mxu0 %v241_v4  ;;  %v1019_v51 = vadd.f32 %v987_v18, %v955_v40  ;;  %v363_v7 = vmul.f32 %v331_v8, %v2043_v46  ;;  %2571 = vst [vmem:[#allocation55_spill] sm:$0xff] %v2060_v44  ;;  %v913_v55 = vsub.f32 -1.1607164, %v2028_v38  ;;  %v346_v18 = vld [vmem:[#allocation8 + $0x190] sm:$0xff] }
  0x65   :  { %v912_v34 = vsub.f32 -1.1607164, %v2030_v53  ;;  %v411_v24 = vadd.f32 %v379_v63, %v2018_v62  ;;  %v225_v56 = vadd.f32 %v193_v19, %v2055_v61  ;;  %2572 = vst [vmem:[#allocation56_spill] sm:$0xff] %v2066_v26  ;;  %v942_v40 = vmul.f32 %v1927_v25, %v1927_v25  ;;  %v2080_v19 = vld [vmem:[#allocation7 + $0x10] sm:$0xff] }
  0x66   :  { %1500 = vlog2.f32 %v2043_v46  ;;  %v395_v8 = vadd.f32 %v363_v7, %v2055_v61  ;;  %v208_v4 = vmul.f32 %v176_v15, %v2058_v13  ;;  %v974_v38 = vmul.f32 %v1941_v49, %v1941_v49  ;;  %2573 = vst [vmem:[#allocation57_spill] sm:$0xff] %v2080_v19  ;;  %v160_v62 = vld [vmem:[#allocation8 + $0x10] sm:$0xff]  ;;  %v1489_v7 = vpop.eup %1488 }
  0x67   :  { %v941_v53 = vmul.f32 %v1966_v22, %v1966_v22  ;;  %v973_v63 = vmul.f32 %v1984_v59, %v1984_v59  ;;  %1380 = vmatprep.subr.mxu1 %v411_v24  ;;  %1346 = vmatpush3.msra.mxu0 %v225_v56  ;;  %1502 = vlog2.f32 %v2058_v13  ;;  %v940_v15 = vmul.f32 %v1999_v58, %v1999_v58  ;;  %v2089_v24 = vpop.eup %1490 }
  0x68   :  { %1381 = vmatpush3.msra.mxu1 %v395_v8  ;;  %v240_v49 = vadd.f32 %v208_v4, %v2066_v26  ;;  %v954_v22 = vmul.f32 %v2058_v13, %v2058_v13  ;;  %v986_v59 = vmul.f32 %v2066_v26, %v2066_v26  ;;  %2574 = vst [vmem:[#allocation58_spill] sm:$0xff] %v2089_v24  ;;  %v881_v56 = vmul.f32 0.6931472, %v1489_v7  ;;  %v330_v24 = vld [vmem:[#allocation8 + $0x110] sm:$0xff] }
  0x69   :  { %v1052_v25 = vmul.f32 5.095132, %v2013_v17  ;;  %v972_v60 = vmul.f32 %v2011_v23, %v2011_v23  ;;  %v378_v44 = vmul.f32 %v346_v18, %v2058_v13  ;;  %v1493_v58 = vpop.eup %1492  ;;  %v2096_v8 = vadd.f32 %v978_v30, %v2024_v37  ;;  %v2107_v13 = vld [vmem:[#allocation5 + $0x10] sm:$0xff]  ;;  %v175_v37 = vld [vmem:[#allocation8 + $0x88] sm:$0xff] }
  0x6a   :  { %1347 = vmatprep.subr.mxu0 %v240_v49  ;;  %v2098_v4 = vadd.f32 %v986_v59, %v954_v22  ;;  %v192_v50 = vmul.f32 %v160_v62, %v2080_v19  ;;  %1504 = vlog2.f32 %v2080_v19  ;;  %v2102_v35 = vadd.f32 %v1041_v31, %v913_v55  ;;  %2576 = vst [vmem:[#allocation60_spill] sm:$0xff] %v2107_v13  ;;  %v2113_v59 = vld [vmem:[#allocation5 + $0x88] sm:$0xff] }
  0x6b   :  { %v1495_v7 = vpop.eup %1494  ;;  %1506 = vlog2.f32 %v1901_v48  ;;  %v2105_v17 = vadd.f32 %v975_v39, %v943_v43  ;;  %v924_v18 = vsub.f32 -1.1607164, %v881_v56  ;;  %v2109_v30 = vadd.f32 %v1040_v2, %v912_v34  ;;  %2578 = vst [vmem:[#allocation62_spill] sm:$0xff] %v2113_v59  ;;  %v2118_v43 = vld [vmem:[#allocation7 + $0x88] sm:$0xff] }
  0x6c   :  { %2575 = vst [vmem:[#allocation59_spill] sm:$0xff] %v2102_v35  ;;  %v1006_v49 = vadd.f32 %v974_v38, %v942_v40  ;;  %v410_v22 = vadd.f32 %v378_v44, %v2066_v26  ;;  %v224_v62 = vadd.f32 %v192_v50, %v2107_v13  ;;  %v1005_v31 = vadd.f32 %v973_v63, %v941_v53  ;;  %v345_v56 = vld [vmem:[#allocation8 + $0x188] sm:$0xff] }
  0x6d   :  { %2577 = vst [vmem:[#allocation61_spill] sm:$0xff] %v2109_v30  ;;  %v1497_v23 = vpop.eup %1496  ;;  %v2115_v55 = vadd.f32 %v1052_v25, %v924_v18  ;;  %v1004_v35 = vadd.f32 %v972_v60, %v940_v15  ;;  %v362_v39 = vmul.f32 %v330_v24, %v2080_v19  ;;  %2580 = vst [vmem:[#allocation64_spill] sm:$0xff] %v2118_v43  ;;  %v159_v48 = vld [vmem:[#allocation8 + $0x8] sm:$0xff]  ;;  %v853_v2 = vmul.f32 0.6931472, %v1493_v58 }
  0x6e   :  { %v879_v34 = vmul.f32 0.6931472, %v1497_v23  ;;  %v1051_v40 = vmul.f32 5.095132, %v1019_v51  ;;  %1382 = vmatprep.subr.mxu1 %v410_v22  ;;  %1348 = vmatpush3.msra.mxu0 %v224_v62  ;;  %v207_v50 = vmul.f32 %v175_v37, %v2118_v43  ;;  %v1499_v44 = vpop.eup %1498  ;;  %v939_v38 = vmul.f32 %v2043_v46, %v2043_v46  ;;  %v2128_v63 = vld [vmem:[#allocation7 + $0x8] sm:$0xff] }
  0x6f   :  { %2579 = vst [vmem:[#allocation63_spill] sm:$0xff] %v2115_v55  ;;  %v971_v60 = vmul.f32 %v2055_v61, %v2055_v61  ;;  %v394_v25 = vadd.f32 %v362_v39, %v2107_v13  ;;  %v953_v53 = vmul.f32 %v2118_v43, %v2118_v43  ;;  %2581 = vst [vmem:[#allocation65_spill] sm:$0xff] %v2128_v63  ;;  %v851_v58 = vmul.f32 0.6931472, %v1495_v7  ;;  %v329_v62 = vld [vmem:[#allocation8 + $0x108] sm:$0xff]  ;;  %v174_v39 = vld [vmem:[#allocation8 + $0x80] sm:$0xff] }
  0x70   :  { %v923_v51 = vsub.f32 -1.1607164, %v879_v34  ;;  %v239_v23 = vadd.f32 %v207_v50, %v2113_v59  ;;  %v985_v15 = vmul.f32 %v2113_v59, %v2113_v59  ;;  %v1038_v24 = vmul.f32 5.095132, %v1006_v49  ;;  %v2139_v34 = vld [vmem:[#allocation5 + $0x8] sm:$0xff]  ;;  %v2175_v61 = vld [vmem:[#allocation5] sm:$0xff] }
  0x71   :  { %v1037_v18 = vmul.f32 5.095132, %v1005_v31  ;;  %1383 = vmatpush3.msra.mxu1 %v394_v25  ;;  %v377_v37 = vmul.f32 %v345_v56, %v2118_v43  ;;  %v191_v22 = vmul.f32 %v159_v48, %v2128_v63  ;;  %v849_v55 = vmul.f32 0.6931472, %v1499_v44  ;;  %2584 = vst [vmem:[#allocation68_spill] sm:$0xff] %v2139_v34  ;;  %v2144_v48 = vld [vmem:[#allocation7 + $0x80] sm:$0xff] }
  0x72   :  { %v2135_v26 = vadd.f32 %v1051_v40, %v923_v51  ;;  %1349 = vmatprep.subr.mxu0 %v239_v23  ;;  %v2137_v7 = vadd.f32 %v985_v15, %v953_v53  ;;  %1508 = vlog2.f32 %v2128_v63  ;;  %v910_v49 = vsub.f32 -1.1607164, %v853_v2  ;;  %v2147_v53 = vld [vmem:[#allocation5 + $0x80] sm:$0xff]  ;;  %v685_v43 = vld [vmem:[#allocation8 + $0x378] sm:$0xff] }
  0x73   :  { %v1501_v50 = vpop.eup %1500  ;;  %v1036_v31 = vmul.f32 5.095132, %v1004_v35  ;;  %v409_v25 = vadd.f32 %v377_v37, %v2113_v59  ;;  %v223_v56 = vadd.f32 %v191_v22, %v2139_v34  ;;  %v909_v44 = vsub.f32 -1.1607164, %v851_v58  ;;  %v344_v15 = vld [vmem:[#allocation8 + $0x180] sm:$0xff] }
  0x74   :  { %2582 = vst [vmem:[#allocation66_spill] sm:$0xff] %v2135_v26  ;;  %2583 = vst [vmem:[#allocation67_spill] sm:$0xff] %v2137_v7  ;;  %v1503_v30 = vpop.eup %1502  ;;  %v1003_v40 = vadd.f32 %v971_v60, %v939_v38  ;;  %v361_v51 = vmul.f32 %v329_v62, %v2128_v63  ;;  %v206_v23 = vmul.f32 %v174_v39, %v2144_v48  ;;  %v1050_v2 = vmul.f32 5.095132, %v2098_v4  ;;  %v2155_v58 = vld [vmem:[#allocation7] sm:$0xff] }
  0x75   :  { %v877_v26 = vmul.f32 0.6931472, %v1503_v30  ;;  %v938_v35 = vmul.f32 %v2080_v19, %v2080_v19  ;;  %v970_v37 = vmul.f32 %v2107_v13, %v2107_v13  ;;  %1384 = vmatprep.subr.mxu1 %v409_v25  ;;  %1350 = vmatpush3.msra.mxu0 %v223_v56  ;;  %v158_v38 = vld [vmem:[#allocation8] sm:$0xff]  ;;  %v908_v60 = vsub.f32 -1.1607164, %v849_v55 }
  0x76   :  { %v847_v22 = vmul.f32 0.6931472, %v1501_v50  ;;  %v393_v62 = vadd.f32 %v361_v51, %v2139_v34  ;;  %v238_v39 = vadd.f32 %v206_v23, %v2147_v53  ;;  %v937_v4 = vmul.f32 %v2128_v63, %v2128_v63  ;;  %v328_v56 = vld [vmem:[#allocation8 + $0x100] sm:$0xff]  ;;  %v701_v51 = vld [vmem:[#allocation8 + $0x3f8] sm:$0xff] }
  0x77   :  { %v1505_v30 = vpop.eup %1504  ;;  %v922_v7 = vsub.f32 -1.1607164, %v877_v26  ;;  %v969_v59 = vmul.f32 %v2139_v34, %v2139_v34  ;;  %v376_v25 = vmul.f32 %v344_v15, %v2144_v48  ;;  %v2166_v19 = vadd.f32 %v1038_v24, %v910_v49  ;;  %v530_v26 = vld [vmem:[#allocation8 + $0x2f8] sm:$0xff] }
  0x78   :  { %v2164_v13 = vpop.eup %1506  ;;  %v1035_v55 = vmul.f32 5.095132, %v1003_v40  ;;  %1385 = vmatpush3.msra.mxu1 %v393_v62  ;;  %1351 = vmatprep.subr.mxu0 %v238_v39  ;;  %v190_v50 = vmul.f32 %v158_v38, %v2155_v58  ;;  %1510 = vlog2.f32 %v2155_v58  ;;  %v2170_v23 = vadd.f32 %v1037_v18, %v909_v44  ;;  %v514_v24 = vld [vmem:[#allocation8 + $0x278] sm:$0xff]  ;;  %v2179_v39 = vld [vmem:[#allocation2] sm:$0xff] }
  0x79   :  { %v2172_v63 = vadd.f32 %v1050_v2, %v922_v7  ;;  %v1002_v34 = vadd.f32 %v970_v37, %v938_v35  ;;  %v408_v15 = vadd.f32 %v376_v25, %v2147_v53  ;;  %v907_v49 = vsub.f32 -1.1607164, %v847_v22  ;;  %v529_v2 = vld [vmem:[#allocation8 + $0x2f0] sm:$0xff] }
  0x7a   :  { %v845_v40 = vmul.f32 0.6931472, %v1505_v30  ;;  %v222_v62 = vadd.f32 %v190_v50, %v2175_v61  ;;  %v360_v38 = vmul.f32 %v328_v56, %v2155_v58  ;;  %v2181_v46 = vadd.f32 %v1036_v31, %v908_v60  ;;  %v700_v31 = vld [vmem:[#allocation8 + $0x3f0] sm:$0xff] }
  0x7b   :  { %v1001_v18 = vadd.f32 %v969_v59, %v937_v4  ;;  %1386 = vmatprep.subr.mxu1 %v408_v15  ;;  %v562_v7 = vmul.f32 %v530_v26, %v1768_v1  ;;  %v733_v44 = vmul.f32 %v701_v51, %v1768_v1  ;;  %v936_v35 = vmul.f32 %v2155_v58, %v2155_v58  ;;  %v513_v60 = vld [vmem:[#allocation8 + $0x270] sm:$0xff] }
  0x7c   :  { %1352 = vmatpush3.msra.mxu0 %v222_v62  ;;  %v968_v37 = vmul.f32 %v2175_v61, %v2175_v61  ;;  %v392_v22 = vadd.f32 %v360_v38, %v2175_v61  ;;  %v546_v30 = vmul.f32 %v514_v24, %v1773_v6  ;;  %v1034_v59 = vmul.f32 5.095132, %v1002_v34  ;;  %v684_v56 = vld [vmem:[#allocation8 + $0x370] sm:$0xff]  ;;  %v528_v24 = vld [vmem:[#allocation8 + $0x2e8] sm:$0xff] }
  0x7d   :  { %v594_v4 = vadd.f32 %v562_v7, %v1766_v0  ;;  %v765_v25 = vadd.f32 %v733_v44, %v1766_v0  ;;  %320 = vmatmul.mubr.f32.vlgmr.msra.gmra.mxu0 %v2179_v39  ;;  %v717_v1 = vmul.f32 %v685_v43, %v1773_v6  ;;  %v2195_v50 = vadd.f32 %v1035_v55, %v907_v49  ;;  %v699_v62 = vld [vmem:[#allocation8 + $0x3e8] sm:$0xff] }
  0x7e   :  { %v906_v26 = vsub.f32 -1.1607164, %v845_v40  ;;  %1387 = vmatpush3.msra.mxu1 %v392_v22  ;;  %v578_v51 = vadd.f32 %v546_v30, %v1771_v5  ;;  %v561_v15 = vmul.f32 %v529_v2, %v1781_v14  ;;  %661 = vmatprep.mubr.f32.mxu0 %v1953_v9  ;;  %v1033_v38 = vmul.f32 5.095132, %v1001_v18  ;;  %v512_v55 = vld [vmem:[#allocation8 + $0x268] sm:$0xff]  ;;  %v527_v30 = vld [vmem:[#allocation8 + $0x2e0] sm:$0xff] }
  0x7f   :  { %v1509_v34 = vpop.eup %1508  ;;  %1391 = vmatprep.subr.mxu0 %v594_v4  ;;  %1426 = vmatprep.subr.mxu1 %v765_v25  ;;  %v749_v0 = vadd.f32 %v717_v1, %v1771_v5  ;;  %v732_v6 = vmul.f32 %v700_v31, %v1781_v14  ;;  %v545_v43 = vmul.f32 %v513_v60, %v1788_v21  ;;  %v683_v2 = vld [vmem:[#allocation8 + $0x368] sm:$0xff]  ;;  %v698_v31 = vld [vmem:[#allocation8 + $0x3e0] sm:$0xff]  ;;  %1512 = vlog2.f32 %v2144_v48 }
  0x80   :  { %v843_v49 = vmul.f32 0.6931472, %v1509_v34  ;;  %v1000_v40 = vadd.f32 %v968_v37, %v936_v35  ;;  %491 = vmatmul.mubr.f32.vlgmr.msra.gmra.mxu1 %v2179_v39  ;;  %1392 = vmatpush3.msra.mxu0 %v578_v51  ;;  %v593_v7 = vadd.f32 %v561_v15, %v1776_v10  ;;  %v716_v44 = vmul.f32 %v684_v56, %v1788_v21  ;;  %v511_v21 = vld [vmem:[#allocation8 + $0x260] sm:$0xff]  ;;  %v510_v34 = vld [vmem:[#allocation8 + $0x258] sm:$0xff] }
  0x81   :  { %1427 = vmatpush3.msra.mxu1 %v749_v0  ;;  %v764_v18 = vadd.f32 %v732_v6, %v1776_v10  ;;  %v577_v5 = vadd.f32 %v545_v43, %v1786_v20  ;;  %v560_v14 = vmul.f32 %v528_v24, %v1795_v28  ;;  %v731_v22 = vmul.f32 %v699_v62, %v1795_v28  ;;  %v682_v25 = vld [vmem:[#allocation8 + $0x360] sm:$0xff]  ;;  %v697_v62 = vld [vmem:[#allocation8 + $0x3d8] sm:$0xff] }
  0x82   :  { %v1066_v35 = vadd.f32 %v1034_v59, %v906_v26  ;;  %v905_v37 = vsub.f32 -1.1607164, %v843_v49  ;;  %1393 = vmatprep.subr.mxu0 %v593_v7  ;;  %v748_v60 = vadd.f32 %v716_v44, %v1786_v20  ;;  %v544_v4 = vmul.f32 %v512_v55, %v1803_v36  ;;  %832 = vmatprep.mubr.f32.mxu1 %v1953_v9  ;;  %v526_v9 = vld [vmem:[#allocation8 + $0x2d8] sm:$0xff]  ;;  %v696_v55 = vld [vmem:[#allocation8 + $0x3d0] sm:$0xff] }
  0x83   :  { %v2214_v10 = vmul.f32 5.095132, %v2096_v8  ;;  %1428 = vmatprep.subr.mxu1 %v764_v18  ;;  %1394 = vmatpush3.msra.mxu0 %v577_v5  ;;  %v592_v28 = vadd.f32 %v560_v14, %v1793_v27  ;;  %v763_v1 = vadd.f32 %v731_v22, %v1793_v27  ;;  %v715_v59 = vmul.f32 %v683_v2, %v1803_v36  ;;  %v680_v5 = vld [vmem:[#allocation8 + $0x350] sm:$0xff] }
  0x84   :  { %v1065_v56 = vadd.f32 %v1033_v38, %v905_v37  ;;  %1429 = vmatpush3.msra.mxu1 %v748_v60  ;;  %v576_v20 = vadd.f32 %v544_v4, %v1799_v33  ;;  %v559_v26 = vmul.f32 %v527_v30, %v1808_v42  ;;  %v730_v51 = vmul.f32 %v698_v31, %v1808_v42  ;;  %v681_v38 = vld [vmem:[#allocation8 + $0x358] sm:$0xff]  ;;  %v524_v31 = vld [vmem:[#allocation8 + $0x2c8] sm:$0xff] }
  0x85   :  { %v1511_v15 = vpop.eup %1510  ;;  %v2223_v8 = vmul.f32 0.6931472, %v2164_v13  ;;  %1395 = vmatprep.subr.mxu0 %v592_v28  ;;  %1430 = vmatprep.subr.mxu1 %v763_v1  ;;  %v747_v24 = vadd.f32 %v715_v59, %v1799_v33  ;;  %v543_v27 = vmul.f32 %v511_v21, %v1819_v52  ;;  %v714_v36 = vmul.f32 %v682_v25, %v1819_v52  ;;  %v525_v13 = vld [vmem:[#allocation8 + $0x2d0] sm:$0xff]  ;;  %v508_v37 = vld [vmem:[#allocation8 + $0x248] sm:$0xff] }
  0x86   :  { %v841_v0 = vmul.f32 0.6931472, %v1511_v15  ;;  %v1032_v6 = vmul.f32 5.095132, %v1000_v40  ;;  %1396 = vmatpush3.msra.mxu0 %v576_v20  ;;  %v591_v42 = vadd.f32 %v559_v26, %v1811_v45  ;;  %v762_v43 = vadd.f32 %v730_v51, %v1811_v45  ;;  %v509_v45 = vld [vmem:[#allocation8 + $0x250] sm:$0xff]  ;;  %v679_v21 = vld [vmem:[#allocation8 + $0x348] sm:$0xff] }
  0x87   :  { %v1287_v49 = vadd.f32 -0.5, %v1066_v35  ;;  %1431 = vmatpush3.msra.mxu1 %v747_v24  ;;  %v575_v33 = vadd.f32 %v543_v27, %v1813_v47  ;;  %v746_v7 = vadd.f32 %v714_v36, %v1813_v47  ;;  %v558_v52 = vmul.f32 %v526_v9, %v1823_v57  ;;  %v695_v35 = vld [vmem:[#allocation8 + $0x3c8] sm:$0xff]  ;;  %v694_v26 = vld [vmem:[#allocation8 + $0x3c0] sm:$0xff] }
  0x88   :  { %v904_v44 = vsub.f32 -1.1607164, %v841_v0  ;;  %1397 = vmatprep.subr.mxu0 %v591_v42  ;;  %1432 = vmatprep.subr.mxu1 %v762_v43  ;;  %v729_v40 = vmul.f32 %v697_v62, %v1823_v57  ;;  %v542_v2 = vmul.f32 %v510_v34, %v1837_v12  ;;  %v713_v18 = vmul.f32 %v681_v38, %v1837_v12  ;;  %v507_v24 = vld [vmem:[#allocation8 + $0x240] sm:$0xff]  ;;  %v2586_v62 = vld [vmem:[#allocation19_spill] sm:$0xff]  ;;  %v2587_v38 = vld [vmem:[#allocation20_spill] sm:$0xff] }
  0x89   :  { %v1286_v14 = vadd.f32 -0.5, %v1065_v56  ;;  %1398 = vmatpush3.msra.mxu0 %v575_v33  ;;  %1433 = vmatpush3.msra.mxu1 %v746_v7  ;;  %v590_v22 = vadd.f32 %v558_v52, %v1829_v3  ;;  %v557_v47 = vmul.f32 %v525_v13, %v1840_v16  ;;  %v728_v30 = vmul.f32 %v696_v55, %v1840_v16  ;;  %v678_v27 = vld [vmem:[#allocation8 + $0x340] sm:$0xff]  ;;  %v693_v55 = vld [vmem:[#allocation8 + $0x3b8] sm:$0xff]  ;;  %v2589_v52 = vld [vmem:[#allocation23_spill] sm:$0xff] }
  0x8a   :  { %v1064_v60 = vadd.f32 %v1032_v6, %v904_v44  ;;  %v761_v57 = vadd.f32 %v729_v40, %v1829_v3  ;;  %v574_v4 = vadd.f32 %v542_v2, %v1835_v11  ;;  %v745_v12 = vadd.f32 %v713_v18, %v1835_v11  ;;  %v523_v11 = vld [vmem:[#allocation8 + $0x2c0] sm:$0xff]  ;;  %v522_v6 = vld [vmem:[#allocation8 + $0x2b8] sm:$0xff] }
  0x8b   :  { %1399 = vmatprep.subr.mxu0 %v590_v22  ;;  %v589_v25 = vadd.f32 %v557_v47, %v1847_v29  ;;  %v760_v28 = vadd.f32 %v728_v30, %v1847_v29  ;;  %v541_v1 = vmul.f32 %v509_v45, %v1851_v32  ;;  %v712_v16 = vmul.f32 %v680_v5, %v1851_v32  ;;  %v2585_v29 = vld [vmem:[#allocation18_spill] sm:$0xff]  ;;  %v2588_v43 = vld [vmem:[#allocation21_spill] sm:$0xff]  ;;  %v506_v2 = vld [vmem:[#allocation8 + $0x238] sm:$0xff] }
  0x8c   :  { %v1285_v59 = vadd.f32 -0.5, %v1064_v60  ;;  %1434 = vmatprep.subr.mxu1 %v761_v57  ;;  %1400 = vmatpush3.msra.mxu0 %v574_v4  ;;  %v556_v56 = vmul.f32 %v524_v31, %v1859_v41  ;;  %v727_v3 = vmul.f32 %v695_v35, %v1859_v41  ;;  %v540_v20 = vmul.f32 %v508_v37, %v1867_v54  ;;  %v2590_v45 = vld [vmem:[#allocation22_spill] sm:$0xff]  ;;  %v2591_v22 = vld [vmem:[#allocation24_spill] sm:$0xff]  ;;  %v2592_v30 = vld [vmem:[#allocation25_spill] sm:$0xff] }
  0x8d   :  { %v1288_v51 = vadd.f32 -0.5, %v2195_v50  ;;  %1435 = vmatpush3.msra.mxu1 %v745_v12  ;;  %1401 = vmatprep.subr.mxu0 %v589_v25  ;;  %v573_v9 = vadd.f32 %v541_v1, %v2585_v29  ;;  %v744_v15 = vadd.f32 %v712_v16, %v2585_v29  ;;  %v711_v32 = vmul.f32 %v679_v21, %v1867_v54  ;;  %v692_v60 = vld [vmem:[#allocation8 + $0x3b0] sm:$0xff]  ;;  %v2594_v12 = vld [vmem:[#allocation26_spill] sm:$0xff]  ;;  %v2597_v29 = vld [vmem:[#allocation29_spill] sm:$0xff] }
  0x8e   :  { %v1129_v36 = vadd.f32 %v1286_v14, %v1285_v59  ;;  %1436 = vmatprep.subr.mxu1 %v760_v28  ;;  %v588_v41 = vadd.f32 %v556_v56, %v2586_v62  ;;  %v759_v34 = vadd.f32 %v727_v3, %v2586_v62  ;;  %v572_v0 = vadd.f32 %v540_v20, %v2587_v38  ;;  %v505_v57 = vld [vmem:[#allocation8 + $0x230] sm:$0xff]  ;;  %v520_v59 = vld [vmem:[#allocation8 + $0x2a8] sm:$0xff] }
  0x8f   :  { %v1039_v50 = vmul.f32 5.095132, %v2105_v17  ;;  %1402 = vmatpush3.msra.mxu0 %v573_v9  ;;  %1437 = vmatpush3.msra.mxu1 %v744_v15  ;;  %v743_v42 = vadd.f32 %v711_v32, %v2587_v38  ;;  %v555_v13 = vmul.f32 %v523_v11, %v2588_v43  ;;  %v726_v54 = vmul.f32 %v694_v26, %v2588_v43  ;;  %v677_v17 = vld [vmem:[#allocation8 + $0x338] sm:$0xff]  ;;  %v2593_v4 = vld [vmem:[#allocation55_spill] sm:$0xff] }
  0x90   :  { %v1289_v33 = vadd.f32 -0.5, %v2181_v46  ;;  %v1130_v7 = vadd.f32 %v1287_v49, %v1129_v36  ;;  %1403 = vmatprep.subr.mxu0 %v588_v41  ;;  %1438 = vmatprep.subr.mxu1 %v759_v34  ;;  %v539_v44 = vmul.f32 %v507_v24, %v2589_v52  ;;  %v710_v40 = vmul.f32 %v678_v27, %v2589_v52  ;;  %v521_v46 = vld [vmem:[#allocation8 + $0x2b0] sm:$0xff]  ;;  %v2596_v11 = vld [vmem:[#allocation28_spill] sm:$0xff]  ;;  %v504_v36 = vld [vmem:[#allocation8 + $0x228] sm:$0xff] }
  0x91   :  { %v911_v18 = vsub.f32 -1.1607164, %v2223_v8  ;;  %1404 = vmatpush3.msra.mxu0 %v572_v0  ;;  %1439 = vmatpush3.msra.mxu1 %v743_v42  ;;  %v587_v5 = vadd.f32 %v555_v13, %v2590_v45  ;;  %v758_v14 = vadd.f32 %v726_v54, %v2590_v45  ;;  %v554_v47 = vmul.f32 %v522_v6, %v2591_v22  ;;  %v2595_v25 = vld [vmem:[#allocation27_spill] sm:$0xff]  ;;  %v2600_v38 = vld [vmem:[#allocation32_spill] sm:$0xff]  ;;  %v675_v6 = vld [vmem:[#allocation8 + $0x328] sm:$0xff] }
  0x92   :  { %v1131_v49 = vadd.f32 %v1288_v51, %v1130_v7  ;;  %v571_v31 = vadd.f32 %v539_v44, %v2592_v30  ;;  %v742_v35 = vadd.f32 %v710_v40, %v2592_v30  ;;  %v725_v37 = vmul.f32 %v693_v55, %v2591_v22  ;;  %v676_v16 = vld [vmem:[#allocation8 + $0x330] sm:$0xff]  ;;  %v691_v51 = vld [vmem:[#allocation8 + $0x3a8] sm:$0xff]  ;;  %v519_v42 = vld [vmem:[#allocation8 + $0x2a0] sm:$0xff] }
  0x93   :  { %v2271_v8 = vmul.f32 0.6931472, %v2593_v4  ;;  %1405 = vmatprep.subr.mxu0 %v587_v5  ;;  %1440 = vmatprep.subr.mxu1 %v758_v14  ;;  %v586_v21 = vadd.f32 %v554_v47, %v2594_v12  ;;  %v538_v28 = vmul.f32 %v506_v2, %v2595_v25  ;;  %v709_v1 = vmul.f32 %v677_v17, %v2595_v25  ;;  %v2598_v24 = vld [vmem:[#allocation31_spill] sm:$0xff]  ;;  %v2601_v54 = vld [vmem:[#allocation33_spill] sm:$0xff]  ;;  %v2602_v44 = vld [vmem:[#allocation34_spill] sm:$0xff] }
  0x94   :  { %v1290_v56 = vadd.f32 -0.5, %v2170_v23  ;;  %v1132_v3 = vadd.f32 %v1289_v33, %v1131_v49  ;;  %1406 = vmatpush3.msra.mxu0 %v571_v31  ;;  %1441 = vmatpush3.msra.mxu1 %v742_v35  ;;  %v757_v20 = vadd.f32 %v725_v37, %v2594_v12  ;;  %v553_v26 = vmul.f32 %v521_v46, %v2596_v11  ;;  %v2599_v23 = vld [vmem:[#allocation30_spill] sm:$0xff]  ;;  %v2603_v2 = vld [vmem:[#allocation39_spill] sm:$0xff]  ;;  %v674_v45 = vld [vmem:[#allocation8 + $0x320] sm:$0xff] }
  0x95   :  { %1407 = vmatprep.subr.mxu0 %v586_v21  ;;  %v570_v9 = vadd.f32 %v538_v28, %v2597_v29  ;;  %v741_v15 = vadd.f32 %v709_v1, %v2597_v29  ;;  %v724_v32 = vmul.f32 %v692_v60, %v2596_v11  ;;  %v537_v27 = vmul.f32 %v505_v57, %v2598_v24  ;;  %v2605_v47 = vld [vmem:[#allocation40_spill] sm:$0xff]  ;;  %v2606_v35 = vld [vmem:[#allocation42_spill] sm:$0xff]  ;;  %v2607_v12 = vld [vmem:[#allocation41_spill] sm:$0xff] }
  0x96   :  { %v1071_v62 = vadd.f32 %v1039_v50, %v911_v18  ;;  %1442 = vmatprep.subr.mxu1 %v757_v20  ;;  %v585_v41 = vadd.f32 %v553_v26, %v2599_v23  ;;  %v708_v34 = vmul.f32 %v676_v16, %v2598_v24  ;;  %v552_v0 = vmul.f32 %v520_v59, %v2600_v38  ;;  %v690_v50 = vld [vmem:[#allocation8 + $0x3a0] sm:$0xff]  ;;  %v518_v49 = vld [vmem:[#allocation8 + $0x298] sm:$0xff]  ;;  %v2608_v25 = vld [vmem:[#allocation43_spill] sm:$0xff] }
  0x97   :  { %v1291_v43 = vadd.f32 -0.5, %v2166_v19  ;;  %1408 = vmatpush3.msra.mxu0 %v570_v9  ;;  %1443 = vmatpush3.msra.mxu1 %v741_v15  ;;  %v756_v13 = vadd.f32 %v724_v32, %v2599_v23  ;;  %v569_v55 = vadd.f32 %v537_v27, %v2601_v54  ;;  %v723_v33 = vmul.f32 %v691_v51, %v2600_v38  ;;  %v503_v18 = vld [vmem:[#allocation8 + $0x220] sm:$0xff]  ;;  %v2604_v19 = vld [vmem:[#allocation58_spill] sm:$0xff]  ;;  %v689_v30 = vld [vmem:[#allocation8 + $0x398] sm:$0xff] }
  0x98   :  { %v1133_v7 = vadd.f32 %v1290_v56, %v1132_v3  ;;  %1409 = vmatprep.subr.mxu0 %v585_v41  ;;  %v740_v52 = vadd.f32 %v708_v34, %v2601_v54  ;;  %v584_v40 = vadd.f32 %v552_v0, %v2602_v44  ;;  %v536_v17 = vmul.f32 %v504_v36, %v2603_v2  ;;  %v502_v57 = vld [vmem:[#allocation8 + $0x218] sm:$0xff]  ;;  %v517_v26 = vld [vmem:[#allocation8 + $0x290] sm:$0xff]  ;;  %v2610_v29 = vld [vmem:[#allocation46_spill] sm:$0xff] }
  0x99   :  { %v2294_v5 = vmul.f32 0.6931472, %v2604_v19  ;;  %1444 = vmatprep.subr.mxu1 %v756_v13  ;;  %1410 = vmatpush3.msra.mxu0 %v569_v55  ;;  %v755_v14 = vadd.f32 %v723_v33, %v2602_v44  ;;  %v707_v22 = vmul.f32 %v675_v6, %v2603_v2  ;;  %v551_v46 = vmul.f32 %v519_v42, %v2605_v47  ;;  %v673_v16 = vld [vmem:[#allocation8 + $0x318] sm:$0xff]  ;;  %v688_v51 = vld [vmem:[#allocation8 + $0x390] sm:$0xff]  ;;  %v2611_v32 = vld [vmem:[#allocation50_spill] sm:$0xff] }
  0x9a   :  { %v1292_v31 = vadd.f32 -0.5, %v1071_v62  ;;  %1445 = vmatpush3.msra.mxu1 %v740_v52  ;;  %1411 = vmatprep.subr.mxu0 %v584_v40  ;;  %v568_v37 = vadd.f32 %v536_v17, %v2606_v35  ;;  %v722_v60 = vmul.f32 %v690_v50, %v2605_v47  ;;  %v535_v28 = vmul.f32 %v503_v18, %v2608_v25  ;;  %v2609_v3 = vld [vmem:[#allocation44_spill] sm:$0xff]  ;;  %v501_v27 = vld [vmem:[#allocation8 + $0x210] sm:$0xff]  ;;  %v2614_v42 = vld [vmem:[#allocation53_spill] sm:$0xff] }
  0x9b   :  { %1446 = vmatprep.subr.mxu1 %v755_v14  ;;  %v739_v4 = vadd.f32 %v707_v22, %v2606_v35  ;;  %v583_v21 = vadd.f32 %v551_v46, %v2607_v12  ;;  %v706_v1 = vmul.f32 %v674_v45, %v2608_v25  ;;  %v1134_v59 = vadd.f32 %v1291_v43, %v1133_v7  ;;  %v2612_v36 = vld [vmem:[#allocation64_spill] sm:$0xff]  ;;  %v2613_v62 = vld [vmem:[#allocation47_spill] sm:$0xff]  ;;  %v2615_v13 = vld [vmem:[#allocation54_spill] sm:$0xff] }
  0x9c   :  { %1412 = vmatpush3.msra.mxu0 %v568_v37  ;;  %v754_v56 = vadd.f32 %v722_v60, %v2607_v12  ;;  %v550_v20 = vmul.f32 %v518_v49, %v2609_v3  ;;  %v721_v11 = vmul.f32 %v689_v30, %v2609_v3  ;;  %1514 = vlog2.f32 %v2600_v38  ;;  %v672_v0 = vld [vmem:[#allocation8 + $0x310] sm:$0xff]  ;;  %v516_v38 = vld [vmem:[#allocation8 + $0x288] sm:$0xff]  ;;  %v2616_v52 = vld [vmem:[#allocation61_spill] sm:$0xff] }
  0x9d   :  { %1447 = vmatpush3.msra.mxu1 %v739_v4  ;;  %1413 = vmatprep.subr.mxu0 %v583_v21  ;;  %v567_v9 = vadd.f32 %v535_v28, %v2610_v29  ;;  %v738_v15 = vadd.f32 %v706_v1, %v2610_v29  ;;  %v534_v24 = vmul.f32 %v502_v57, %v2611_v32  ;;  %1516 = vlog2.f32 %v2612_v36  ;;  %v687_v33 = vld [vmem:[#allocation8 + $0x388] sm:$0xff]  ;;  %v2617_v17 = vld [vmem:[#allocation57_spill] sm:$0xff]  ;;  %v2618_v45 = vld [vmem:[#allocation56_spill] sm:$0xff] }
  0x9e   :  { %1448 = vmatprep.subr.mxu1 %v754_v56  ;;  %v582_v23 = vadd.f32 %v550_v20, %v2613_v62  ;;  %v753_v41 = vadd.f32 %v721_v11, %v2613_v62  ;;  %v705_v34 = vmul.f32 %v673_v16, %v2611_v32  ;;  %v914_v6 = vsub.f32 -1.1607164, %v2294_v5  ;;  %v500_v50 = vld [vmem:[#allocation8 + $0x208] sm:$0xff]  ;;  %v2619_v47 = vld [vmem:[#allocation60_spill] sm:$0xff]  ;;  %v2620_v30 = vld [vmem:[#allocation65_spill] sm:$0xff]  ;;  %v1513_v62 = vpop.eup %1512 }
  0x9f   :  { %1414 = vmatpush3.msra.mxu0 %v567_v9  ;;  %1449 = vmatpush3.msra.mxu1 %v738_v15  ;;  %v566_v43 = vadd.f32 %v534_v24, %v2614_v42  ;;  %v549_v54 = vmul.f32 %v517_v26, %v2615_v13  ;;  %v720_v55 = vmul.f32 %v688_v51, %v2615_v13  ;;  %v671_v7 = vld [vmem:[#allocation8 + $0x308] sm:$0xff]  ;;  %v1293_v44 = vadd.f32 -0.5, %v2616_v52  ;;  %v2621_v37 = vld [vmem:[#allocation51_spill] sm:$0xff]  ;;  %v2622_v57 = vld [vmem:[#allocation52_spill] sm:$0xff] }
  0xa0   :  { %v1135_v40 = vadd.f32 %v1292_v31, %v1134_v59  ;;  %1415 = vmatprep.subr.mxu0 %v582_v23  ;;  %1450 = vmatprep.subr.mxu1 %v753_v41  ;;  %v737_v2 = vadd.f32 %v705_v34, %v2614_v42  ;;  %v533_v18 = vmul.f32 %v501_v27, %v2617_v17  ;;  %v867_v60 = vmul.f32 0.6931472, %v2621_v37  ;;  %v2623_v21 = vld [vmem:[#allocation62_spill] sm:$0xff]  ;;  %v2624_v28 = vld [vmem:[#allocation37_spill] sm:$0xff]  ;;  %v2625_v59 = vld [vmem:[#allocation68_spill] sm:$0xff] }
  0xa1   :  { %1416 = vmatpush3.msra.mxu0 %v566_v43  ;;  %v581_v19 = vadd.f32 %v549_v54, %v2618_v45  ;;  %v752_v5 = vadd.f32 %v720_v55, %v2618_v45  ;;  %v704_v14 = vmul.f32 %v672_v0, %v2617_v17  ;;  %v548_v22 = vmul.f32 %v516_v38, %v2612_v36  ;;  %v2626_v20 = vld [vmem:[#allocation49_spill] sm:$0xff]  ;;  %v2628_v29 = vld [vmem:[#allocation48_spill] sm:$0xff]  ;;  %v2629_v24 = vld [vmem:[#allocation59_spill] sm:$0xff] }
  0xa2   :  { %1451 = vmatpush3.msra.mxu1 %v737_v2  ;;  %v565_v46 = vadd.f32 %v533_v18, %v2619_v47  ;;  %v719_v49 = vmul.f32 %v687_v33, %v2612_v36  ;;  %v532_v31 = vmul.f32 %v500_v50, %v2620_v30  ;;  %v703_v35 = vmul.f32 %v671_v7, %v2620_v30  ;;  %v2627_v26 = vld [vmem:[#allocation45_spill] sm:$0xff]  ;;  %v2630_v34 = vld [vmem:[#allocation38_spill] sm:$0xff]  ;;  %v2347_v38 = vld [vmem:[#allocation7 + $0xf8] sm:$0xff] }
  0xa3   :  { %v865_v4 = vmul.f32 0.6931472, %v2622_v57  ;;  %1417 = vmatprep.subr.mxu0 %v581_v19  ;;  %1452 = vmatprep.subr.mxu1 %v752_v5  ;;  %v736_v12 = vadd.f32 %v704_v14, %v2619_v47  ;;  %v580_v25 = vadd.f32 %v548_v22, %v2623_v21  ;;  %v1045_v1 = vmul.f32 5.095132, %v2624_v28  ;;  %v2631_v42 = vld [vmem:[#allocation35_spill] sm:$0xff]  ;;  %v1542_v54 = vld [vmem:[#allocation7 + $0xb8] sm:$0xff] }
  0xa4   :  { %1418 = vmatpush3.msra.mxu0 %v565_v46  ;;  %v751_v16 = vadd.f32 %v719_v49, %v2623_v21  ;;  %v564_v56 = vadd.f32 %v532_v31, %v2625_v59  ;;  %v735_v3 = vadd.f32 %v703_v35, %v2625_v59  ;;  %v871_v11 = vmul.f32 0.6931472, %v2626_v20  ;;  %v1543_v55 = vld [vmem:[#allocation7 + $0xa8] sm:$0xff]  ;;  %v1545_v14 = vld [vmem:[#allocation7 + $0xc0] sm:$0xff]  ;;  %v2362_v28 = vld [vmem:[#allocation7 + $0xd0] sm:$0xff] }
  0xa5   :  { %v918_v51 = vsub.f32 -1.1607164, %v2627_v26  ;;  %v1043_v9 = vmul.f32 5.095132, %v2628_v29  ;;  %1453 = vmatpush3.msra.mxu1 %v736_v12  ;;  %1419 = vmatprep.subr.mxu0 %v580_v25  ;;  %v915_v15 = vsub.f32 -1.1607164, %v2271_v8  ;;  %v1074_v32 = vadd.f32 %v2214_v10, %v914_v6 }
  0xa6   :  { %v1294_v27 = vadd.f32 -0.5, %v2629_v24  ;;  %v1136_v36 = vadd.f32 %v1293_v44, %v1135_v40  ;;  %1454 = vmatprep.subr.mxu1 %v751_v16  ;;  %1420 = vmatpush3.msra.mxu0 %v564_v56  ;;  %v917_v23 = vsub.f32 -1.1607164, %v867_v60  ;;  %v916_v41 = vsub.f32 -1.1607164, %v865_v4  ;;  %v1541_v8 = vld [vmem:[#allocation7 + $0xb0] sm:$0xff] }
  0xa7   :  { %v1044_v0 = vmul.f32 5.095132, %v2630_v34  ;;  %1455 = vmatpush3.msra.mxu1 %v735_v3  ;;  %1518 = vlog2.f32 %v2347_v38  ;;  %v1047_v43 = vmul.f32 5.095132, %v2631_v42  ;;  %v952_v10 = vmul.f32 %v2144_v48, %v2144_v48  ;;  %v1544_v50 = vld [vmem:[#allocation5 + $0xa8] sm:$0xff]  ;;  %v2632_v44 = vld [vmem:[#allocation36_spill] sm:$0xff] }
  0xa8   :  { %1520 = vlog2.f32 %v1541_v8  ;;  %v984_v6 = vmul.f32 %v2147_v53, %v2147_v53  ;;  %v919_v13 = vsub.f32 -1.1607164, %v871_v11  ;;  %v957_v33 = vmul.f32 %v1543_v55, %v1543_v55  ;;  %v2356_v46 = vld [vmem:[#allocation7 + $0xe8] sm:$0xff]  ;;  %v686_v16 = vld [vmem:[#allocation8 + $0x380] sm:$0xff]  ;;  %v1549_v59 = vld [vmem:[#allocation5 + $0xb8] sm:$0xff] }
  0xa9   :  { %1522 = vlog2.f32 %v1542_v54  ;;  %v989_v7 = vmul.f32 %v1544_v50, %v1544_v50  ;;  %v1515_v52 = vpop.eup %1514  ;;  %v1078_v40 = vadd.f32 %v2632_v44, %v918_v51  ;;  %v1075_v2 = vadd.f32 %v1043_v9, %v915_v15  ;;  %v2359_v35 = vld [vmem:[#allocation7 + $0xc8] sm:$0xff]  ;;  %v499_v26 = vld [vmem:[#allocation8 + $0x200] sm:$0xff]  ;;  %v1550_v29 = vld [vmem:[#allocation5 + $0xb0] sm:$0xff] }
  0xaa   :  { %v1295_v17 = vadd.f32 -0.5, %v1074_v32  ;;  %v1137_v18 = vadd.f32 %v1294_v27, %v1136_v36  ;;  %v1517_v45 = vpop.eup %1516  ;;  %v1077_v19 = vadd.f32 %v1045_v1, %v917_v23  ;;  %v1076_v5 = vadd.f32 %v1044_v0, %v916_v41  ;;  %v515_v1 = vld [vmem:[#allocation8 + $0x280] sm:$0xff]  ;;  %v2365_v24 = vld [vmem:[#allocation7 + $0xd8] sm:$0xff]  ;;  %v2633_v36 = vld [vmem:[#allocation67_spill] sm:$0xff] }
  0xab   :  { %1524 = vlog2.f32 %v1545_v14  ;;  %v873_v22 = vmul.f32 0.6931472, %v1513_v62  ;;  %v1016_v47 = vadd.f32 %v984_v6, %v952_v10  ;;  %v1079_v49 = vadd.f32 %v1047_v43, %v919_v13  ;;  %v670_v51 = vld [vmem:[#allocation8 + $0x300] sm:$0xff] }
  0xac   :  { %1526 = vlog2.f32 %v2356_v46  ;;  %v883_v30 = vmul.f32 0.6931472, %v1515_v52  ;;  %v1021_v31 = vadd.f32 %v989_v7, %v957_v33  ;;  %v1299_v37 = vadd.f32 -0.5, %v1078_v40  ;;  %v2370_v34 = vld [vmem:[#allocation7 + $0xe0] sm:$0xff] }
  0xad   :  { %1528 = vlog2.f32 %v2359_v35  ;;  %v1296_v60 = vadd.f32 -0.5, %v1075_v2  ;;  %v875_v57 = vmul.f32 0.6931472, %v1517_v45  ;;  %v1138_v4 = vadd.f32 %v1295_v17, %v1137_v18  ;;  %v1553_v33 = vld [vmem:[#allocation5 + $0xc0] sm:$0xff] }
  0xae   :  { %v1298_v12 = vadd.f32 -0.5, %v1077_v19  ;;  %v1297_v21 = vadd.f32 -0.5, %v1076_v5  ;;  %v959_v25 = vmul.f32 %v1542_v54, %v1542_v54  ;;  %1530 = vlog2.f32 %v2362_v28  ;;  %v2382_v19 = vld [vmem:[#allocation7 + $0xf0] sm:$0xff] }
  0xaf   :  { %v991_v56 = vmul.f32 %v1549_v59, %v1549_v59  ;;  %v958_v3 = vmul.f32 %v1541_v8, %v1541_v8  ;;  %v920_v20 = vsub.f32 -1.1607164, %v873_v22  ;;  %v1048_v11 = vmul.f32 5.095132, %v1016_v47  ;;  %v1555_v22 = vld [vmem:[#allocation5 + $0xf0] sm:$0xff] }
  0xb0   :  { %v990_v9 = vmul.f32 %v1550_v29, %v1550_v29  ;;  %v925_v15 = vsub.f32 -1.1607164, %v883_v30  ;;  %v1053_v32 = vmul.f32 5.095132, %v1021_v31  ;;  %1532 = vlog2.f32 %v2365_v24  ;;  %v1556_v31 = vld [vmem:[#allocation5 + $0xd0] sm:$0xff] }
  0xb1   :  { %v921_v27 = vsub.f32 -1.1607164, %v875_v57  ;;  %v1049_v62 = vmul.f32 5.095132, %v2633_v36  ;;  %v1139_v23 = vadd.f32 %v1296_v60, %v1138_v4  ;;  %v547_v41 = vmul.f32 %v515_v1, %v2144_v48  ;;  %v1557_v57 = vld [vmem:[#allocation5 + $0xc8] sm:$0xff] }
  0xb2   :  { %1534 = vlog2.f32 %v2370_v34  ;;  %v718_v0 = vmul.f32 %v686_v16, %v2144_v48  ;;  %v531_v42 = vmul.f32 %v499_v26, %v2155_v58  ;;  %v702_v43 = vmul.f32 %v670_v51, %v2155_v58 }
  0xb3   :  { %v960_v10 = vmul.f32 %v1545_v14, %v1545_v14  ;;  %v1080_v6 = vadd.f32 %v1048_v11, %v920_v20  ;;  %v1140_v13 = vadd.f32 %v1297_v21, %v1139_v23  ;;  %v579_v54 = vadd.f32 %v547_v41, %v2147_v53  ;;  %v2634_v20 = vld [vmem:[#allocation63_spill] sm:$0xff]  ;;  %v1558_v41 = vld [vmem:[#allocation5 + $0xd8] sm:$0xff] }
  0xb4   :  { %v2376_v8 = vpop.eup %1518  ;;  %v992_v50 = vmul.f32 %v1553_v33, %v1553_v33  ;;  %v750_v7 = vadd.f32 %v718_v0, %v2147_v53  ;;  %v563_v52 = vadd.f32 %v531_v42, %v2175_v61  ;;  %v734_v48 = vadd.f32 %v702_v43, %v2175_v61 }
  0xb5   :  { %v1521_v55 = vpop.eup %1520  ;;  %v1300_v40 = vadd.f32 -0.5, %v1079_v49  ;;  %v1023_v2 = vadd.f32 %v991_v56, %v959_v25  ;;  %v1081_v58 = vadd.f32 %v1049_v62, %v921_v27  ;;  %v1141_v17 = vadd.f32 %v1298_v12, %v1140_v13  ;;  %1421 = vmatprep.subr.mxu0 %v579_v54 }
  0xb6   :  { %v1523_v44 = vpop.eup %1522  ;;  %v1022_v18 = vadd.f32 %v990_v9, %v958_v3  ;;  %v1085_v45 = vadd.f32 %v1053_v32, %v925_v15  ;;  %1536 = vlog2.f32 %v2382_v19  ;;  %v2387_v5 = vmul.f32 %v2347_v38, %v2347_v38  ;;  %1456 = vmatprep.subr.mxu1 %v750_v7  ;;  %1422 = vmatpush3.msra.mxu0 %v563_v52 }
  0xb7   :  { %v1301_v61 = vadd.f32 -0.5, %v1080_v6  ;;  %v885_v14 = vmul.f32 0.6931472, %v1521_v55  ;;  %v2389_v47 = vmul.f32 %v1555_v22, %v1555_v22  ;;  %v1142_v49 = vadd.f32 %v1299_v37, %v1141_v17  ;;  %1457 = vmatpush3.msra.mxu1 %v734_v48  ;;  %662 = vmatmul.mubr.f32.vlgmr.msra.gmra.mxu0 %v2179_v39  ;;  %v2398_v37 = vld [vmem:[%s2460_s5] sm:$0x1]  ;;  %v1559_v6 = vld [vmem:[#allocation5 + $0xe0] sm:$0xff] }
  0xb8   :  { %v1525_v53 = vpop.eup %1524  ;;  %v994_v60 = vmul.f32 %v1556_v31, %v1556_v31  ;;  %v993_v4 = vmul.f32 %v1557_v57, %v1557_v57  ;;  %v1024_v12 = vadd.f32 %v992_v50, %v960_v10  ;;  %v887_v38 = vmul.f32 0.6931472, %v1523_v44  ;;  %833 = vmatmul.mubr.f32.vlgmr.msra.gmra.mxu1 %v2179_v39  ;;  %v1560_v44 = vld [vmem:[#allocation5 + $0xe8] sm:$0xff] }
  0xb9   :  { %v1527_v30 = vpop.eup %1526  ;;  %v1055_v25 = vmul.f32 5.095132, %v1023_v2  ;;  %v1302_v1 = vadd.f32 -0.5, %v1081_v58  ;;  %v961_v16 = vmul.f32 %v2359_v35, %v2359_v35  ;;  %v1143_v59 = vadd.f32 %v1300_v40, %v1142_v49  ;;  %v2635_v35 = vld [vmem:[#allocation66_spill] sm:$0xff] }
  0xba   :  { %v1529_v21 = vpop.eup %1528  ;;  %v1054_v56 = vmul.f32 5.095132, %v1022_v18  ;;  %v1306_v3 = vadd.f32 -0.5, %v1085_v45  ;;  %v1305_v11 = vadd.f32 -0.5, %v2634_v20  ;;  %v889_v26 = vmul.f32 0.6931472, %v1525_v53 }
  0xbb   :  { %v1531_v51 = vpop.eup %1530  ;;  %v1303_v39 = vadd.f32 -0.5, %v2172_v63  ;;  %v926_v29 = vsub.f32 -1.1607164, %v885_v14  ;;  %v962_v9 = vmul.f32 %v2362_v28, %v2362_v28  ;;  %v1144_v15 = vadd.f32 %v1301_v61, %v1143_v59  ;;  %v2417_v59 = vld [vmem:[%s2459_s4] sm:$0x1] }
  0xbc   :  { %v1304_v32 = vadd.f32 -0.5, %v2635_v35  ;;  %v891_v27 = vmul.f32 0.6931472, %v1529_v21  ;;  %v927_v36 = vsub.f32 -1.1607164, %v887_v38  ;;  %1538 = vlog2.f32 %v2398_v37 }
  0xbd   :  { %v1533_v62 = vpop.eup %1532  ;;  %v963_v23 = vmul.f32 %v2365_v24, %v2365_v24  ;;  %v995_v0 = vmul.f32 %v1558_v41, %v1558_v41  ;;  %v1025_v42 = vadd.f32 %v993_v4, %v961_v16  ;;  %v1145_v43 = vadd.f32 %v1302_v1, %v1144_v15 }
  0xbe   :  { %v893_v63 = vmul.f32 0.6931472, %v1531_v51  ;;  %v928_v10 = vsub.f32 -1.1607164, %v889_v26  ;;  %v964_v28 = vmul.f32 %v2370_v34, %v2370_v34  ;;  %v996_v13 = vmul.f32 %v1559_v6, %v1559_v6 }
  0xbf   :  { %v1535_v54 = vpop.eup %1534  ;;  %v1026_v55 = vadd.f32 %v994_v60, %v962_v9  ;;  %v1056_v33 = vmul.f32 5.095132, %v1024_v12  ;;  %v1086_v50 = vadd.f32 %v1054_v56, %v926_v29  ;;  %v1146_v7 = vadd.f32 %v1303_v39, %v1145_v43 }
  0xc0   :  { %v895_v52 = vmul.f32 0.6931472, %v1533_v62  ;;  %v929_v48 = vsub.f32 -1.1607164, %v891_v27  ;;  %v965_v24 = vmul.f32 %v2356_v46, %v2356_v46  ;;  %v997_v40 = vmul.f32 %v1560_v44, %v1560_v44  ;;  %v1561_v46 = vld [vmem:[#allocation5 + $0xf8] sm:$0xff] }
  0xc1   :  { %v1027_v2 = vadd.f32 %v995_v0, %v963_v23  ;;  %v1057_v58 = vmul.f32 5.095132, %v1025_v42  ;;  %v1087_v17 = vadd.f32 %v1055_v25, %v927_v36  ;;  %v1147_v18 = vadd.f32 %v1304_v32, %v1146_v7 }
  0xc2   :  { %v897_v45 = vmul.f32 0.6931472, %v1535_v54  ;;  %v930_v34 = vsub.f32 -1.1607164, %v893_v63  ;;  %v966_v53 = vmul.f32 %v2382_v19, %v2382_v19  ;;  %v1028_v61 = vadd.f32 %v996_v13, %v964_v28 }
  0xc3   :  { %v1537_v14 = vpop.eup %1536  ;;  %v1058_v22 = vmul.f32 5.095132, %v1026_v55  ;;  %v1088_v49 = vadd.f32 %v1056_v33, %v928_v10  ;;  %v1307_v31 = vadd.f32 -0.5, %v1086_v50  ;;  %v1148_v60 = vadd.f32 %v1305_v11, %v1147_v18 }
  0xc4   :  { %v899_v57 = vmul.f32 0.6931472, %v1527_v30  ;;  %v931_v4 = vsub.f32 -1.1607164, %v895_v52  ;;  %v999_v12 = vmul.f32 %v1561_v46, %v1561_v46  ;;  %v1029_v38 = vadd.f32 %v997_v40, %v965_v24 }
  0xc5   :  { %v1059_v21 = vmul.f32 5.095132, %v1027_v2  ;;  %v1089_v1 = vadd.f32 %v1057_v58, %v929_v48  ;;  %v1308_v25 = vadd.f32 -0.5, %v1087_v17  ;;  %v1149_v16 = vadd.f32 %v1306_v3, %v1148_v60 }
  0xc6   :  { %v901_v19 = vmul.f32 0.6931472, %v1537_v14  ;;  %v903_v56 = vmul.f32 0.6931472, %v2376_v8  ;;  %v932_v20 = vsub.f32 -1.1607164, %v897_v45  ;;  %v1030_v11 = vadd.f32 %v2389_v47, %v966_v53 }
  0xc7   :  { %v1060_v30 = vmul.f32 5.095132, %v1028_v61  ;;  %v1090_v26 = vadd.f32 %v1058_v22, %v930_v34  ;;  %v1309_v51 = vadd.f32 -0.5, %v1088_v49  ;;  %v1150_v39 = vadd.f32 %v1307_v31, %v1149_v16  ;;  %v1178_v61 = vld [vmem:[%s2461_s6] sm:$0x1] }
  0xc8   :  { %v933_v29 = vsub.f32 -1.1607164, %v899_v57  ;;  %v1031_v9 = vadd.f32 %v999_v12, %v2387_v5  ;;  %v1231_v3 = vmul.f32 %v2398_v37, %v2398_v37  ;;  %v1232_v15 = vmul.f32 %v2417_v59, %v2417_v59  ;;  %v1317_v49 = vld [vmem:[%s2461_s6 + $0x1] sm:$0x1] }
  0xc9   :  { %v1539_v35 = vpop.eup %1538  ;;  %v1061_v32 = vmul.f32 5.095132, %v1029_v38  ;;  %v1091_v27 = vadd.f32 %v1059_v21, %v931_v4  ;;  %v1310_v8 = vadd.f32 -0.5, %v1089_v1  ;;  %v1151_v36 = vadd.f32 %v1308_v25, %v1150_v39 }
  0xca   :  { %v934_v62 = vsub.f32 -1.1607164, %v901_v19  ;;  %v1062_v47 = vmul.f32 5.095132, %v1030_v11  ;;  %v1092_v23 = vadd.f32 %v1060_v30, %v932_v20  ;;  %v1311_v41 = vadd.f32 -0.5, %v1090_v26 }
  0xcb   :  { %v1152_v0 = vadd.f32 %v1309_v51, %v1151_v36  ;;  %v935_v42 = vsub.f32 -1.1607164, %v903_v56  ;;  %v1229_v43 = vmul.f32 0.6931472, %v1539_v35  ;;  %v1233_v63 = vadd.f32 %v1232_v15, %v1231_v3  ;;  %v1319_v36 = vld [vmem:[%s2461_s6 + $0x3] sm:$0x1] }
  0xcc   :  { %v1063_v5 = vmul.f32 5.095132, %v1031_v9  ;;  %v1093_v10 = vadd.f32 %v1061_v32, %v933_v29  ;;  %v1312_v28 = vadd.f32 -0.5, %v1091_v27  ;;  %v1094_v13 = vadd.f32 %v1062_v47, %v934_v62 }
  0xcd   :  { %v1153_v6 = vadd.f32 %v1310_v8, %v1152_v0  ;;  %v1313_v54 = vadd.f32 -0.5, %v1092_v23  ;;  %v1230_v33 = vsub.f32 -1.1607164, %v1229_v43  ;;  %v1234_v50 = vmul.f32 5.095132, %v1233_v63 }
  0xce   :  { %v1095_v7 = vadd.f32 %v1063_v5, %v935_v42  ;;  %v1314_v52 = vadd.f32 -0.5, %v1093_v10  ;;  %v1315_v24 = vadd.f32 -0.5, %v1094_v13  ;;  %v1182_v53 = vlaneseq  ;;  %v1318_v8 = vld [vmem:[%s2461_s6 + $0x2] sm:$0x1]  ;;  %s1698_s6 = smov [#allocation10]  }
  0xcf   :  { %v1154_v55 = vadd.f32 %v1311_v41, %v1153_v6  ;;  %v1235_v40 = vadd.f32 %v1234_v50, %v1230_v33  ;;  %v1179_v14 = vmul.f32 %v1178_v61, %v2398_v37  ;;  %v1192_v31 = vmul.f32 %v1317_v49, %v2398_v37  ;;  %s1257_s13 = sshll.u32 %s1698_s6, 4  ;;  %s1258_s13 = int_to_ptr.vmem [resolvable:$true] %s1257_s13 }
  0xd0   :  { %v1316_v2 = vadd.f32 -0.5, %v1095_v7  ;;  %v1183_v22 = vshrl.u32 %v1182_v53, 7  ;;  %v1205_v47 = vmul.f32 %v1318_v8, %v2398_v37  ;;  %v1218_v41 = vmul.f32 %v1319_v36, %v2398_v37  ;;  %s1642_s14 = scalar_lea.vmem %s1258_s13, 512  ;;  %p1647_p7 = scmp.lt.s32.totalorder %s1258_s13, %s1258_s13 }
  0xd1   :  { %v1155_v48 = vadd.f32 %v1312_v28, %v1154_v55  ;;  %v1320_v18 = vadd.f32 -0.5, %v1235_v40  ;;  %v1180_v60 = vadd.f32 %v1179_v14, %v2417_v59  ;;  %v1193_v12 = vadd.f32 %v1192_v31, %v2417_v59  ;;  %p1643_p6 = scmp.ne.s32.totalorder %s1258_s13, %s1642_s14  ;;  %p1648_p8 = scmp.lt.s32.totalorder %s1642_s14, %s1642_s14 }
  0xd2   :  { %v1184_v57 = vsub.s32 0, %v1183_v22  ;;  %v1206_v0 = vadd.f32 %v1205_v47, %v2417_v59  ;;  %v1219_v43 = vadd.f32 %v1218_v41, %v2417_v59 }
  0xd3   :  { %v1156_v44 = vadd.f32 %v1313_v54, %v1155_v48  ;;  %v1239_v34 = vsel %vm1238_vm0, %v1320_v18, 0.0  ;;  %p1649_p9 = por %p1648_p8, %p1647_p7 }
  0xd4   :  { %v1185_v1 = vrot.slane %v1180_v60, %v1184_v57  ;;  %v1198_v19 = vrot.slane %v1193_v12, %v1184_v57  ;;  %v1211_v6 = vrot.slane %v1206_v0, %v1184_v57  ;;  %v1224_v54 = vrot.slane %v1219_v43, %v1184_v57 }
  0xd5   :  { %v1157_v58 = vadd.f32 %v1314_v52, %v1156_v44  ;;  %p1650_p10 = pnand %p1649_p9, %p1643_p6 }
  0xd7   :  { %v1158_v17 = vadd.f32 %v1315_v24, %v1157_v58 }
  0xd9   :  { %v1159_v45 = vadd.f32 %v1316_v2, %v1158_v17 }
  0xdb   :  { %1160 = vadd.xlane.f32.xlu0 %v1159_v45 }
  0xdf   :  { %1240 = vadd.xlane.f32.xlu0 %v1239_v34 }
 0x13d   :  { %v1353_v4 = vpop.f32.mrf.mxu0 }
 0x13f   :  { %v1354_v46 = vpop.f32.mrf.mxu0 }
 0x140   :  { %v1388_v38 = vpop.f32.mrf.mxu1  ;;  %v1355_v21 = vadd.f32 %v1354_v46, %v1353_v4 }
 0x142   :  { %v1389_v25 = vpop.f32.mrf.mxu1  ;;  %v1187_v56 = vadd.f32 %v1355_v21, %v1185_v1 }
 0x143   :  { %v1390_v16 = vadd.f32 %v1389_v25, %v1388_v38 }
 0x144   :  { %1188 = vst [vmem:[#allocation10] sm:$0xff] %v1187_v56 }
 0x145   :  { %v1200_v20 = vadd.f32 %v1390_v16, %v1198_v19 }
 0x147   :  { %1201 = vst [vmem:[#allocation10 + $0x8] sm:$0xff] %v1200_v20 }
 0x164   :  { %v1161_v11 = vpop.xlane.xlu0 %1160 }
 0x165   :  { %v1162_v30 = vrot.slane %v1161_v11, 4 }
 0x167   :  { %v1163_v26 = vadd.f32 %v1162_v30, %v1161_v11 }
 0x168   :  { %v1241_v51 = vpop.xlane.xlu0 %1240 }
 0x169   :  { %v1164_v39 = vrot.slane %v1163_v26, 2  ;;  %v1242_v29 = vrot.slane %v1241_v51, 4 }
 0x16b   :  { %v1243_v9 = vadd.f32 %v1242_v29, %v1241_v51  ;;  %v1165_v3 = vadd.f32 %v1164_v39, %v1163_v26 }
 0x16d   :  { %v1244_v15 = vrot.slane %v1243_v9, 2  ;;  %v1166_v35 = vrot.slane %v1165_v3, 1 }
 0x16f   :  { %v1245_v32 = vadd.f32 %v1244_v15, %v1243_v9  ;;  %v1167_v27 = vadd.f32 %v1166_v35, %v1165_v3 }
 0x171   :  { %1461 = vpush %v1167_v27  ;;  %v1246_v62 = vrot.slane %v1245_v32, 1 }
 0x173   :  { %v1247_v23 = vadd.f32 %v1246_v62, %v1245_v32 }
 0x175   :  { %1463 = vpush %v1247_v23 }
 0x177   :  { %v1423_v42 = vpop.f32.mrf.mxu0 }
 0x178   :  { %v1458_v63 = vpop.f32.mrf.mxu1 }
 0x179   :  { %v1424_v5 = vpop.f32.mrf.mxu0 }
 0x17a   :  { %v1425_v10 = vadd.f32 %v1424_v5, %v1423_v42  ;;  %v1459_v28 = vpop.f32.mrf.mxu1 }
 0x17b   :  { %v1460_v13 = vadd.f32 %v1459_v28, %v1458_v63 }
 0x17c   :  { %v1213_v55 = vadd.f32 %v1425_v10, %v1211_v6 }
 0x17d   :  { %v1226_v33 = vadd.f32 %v1460_v13, %v1224_v54 }
 0x17e   :  { %1214 = vst [vmem:[#allocation10 + $0x10] sm:$0xff] %v1213_v55 }
 0x17f   :  { %1227 = vst [vmem:[#allocation10 + $0x18] sm:$0xff] %v1226_v33 }
 0x180   :  { %1653 = shalt.err (!%p1650_p10)
}
 0x181   :  { %1263 = dma.vmem_to_hbm [thread:$0]  %s1258_s13, 512, %s2462_s7, [#allocation4], %s1693_s30, %s1693_s30, %s1694_s9  }
 0x182   :  { %s1699_s18 = smov [#allocation11]  }
 0x183   :  { %s1270_s19 = sshll.u32 %s1699_s18, 4  ;;  %s1271_s19 = int_to_ptr.vmem [resolvable:$true] %s1270_s19 }
 0x184   :  { %s1662_s20 = scalar_lea.vmem %s1271_s19, 128  ;;  %p1667_p12 = scmp.lt.s32.totalorder %s1271_s19, %s1271_s19 }
 0x185   :  { %p1663_p11 = scmp.ne.s32.totalorder %s1271_s19, %s1662_s20  ;;  %p1668_p13 = scmp.lt.s32.totalorder %s1662_s20, %s1662_s20 }
 0x187   :  { %p1669_p0 = por %p1668_p13, %p1667_p12 }
 0x189   :  { %p1670_p1 = pnand %p1669_p0, %p1663_p11 }
 0x1a2   :  { %s1462_s17 = spop %1461 }
 0x1a3   :  { %v1169_v37 = vstv %s1462_s17 }
 0x1a6   :  { %s1464_s1 = spop %1463 }
 0x1a7   :  { %v1249_v59 = vstv %s1464_s1 }
 0x1a8   :  { %v1250_v50 = vadd.f32 %v1249_v59, %v1169_v37 }
 0x1aa   :  { %1251 = vst [vmem:[#allocation11] sm:$0xff] %v1250_v50 }
 0x1ab   :  { %1673 = shalt.err (!%p1670_p1)
}
 0x1ac   :  { %1273 = dma.vmem_to_hbm [thread:$0]  %s1271_s19, 128, %s2463_s8, [#allocation12]  }
 0x1ad   :  { %1688 = dma.done.wait [#allocation4], 512  }
 0x1ae   :  { %1689 = vsyncadd [#allocation4], 4294966784 }
 0x1af   :  { %1690 = dma.done.wait [#allocation12], 128  }
 0x1b0   :  { %1691 = vsyncadd [#allocation12], 4294967168 }
 0x1b1   :  { %1280 = vsyncpa [#allocation3], 1 }
 0x1b2   :  { %1281 = vsyncpa [#allocation6], 1 }
 0x1b3   :  { %1282 = vsyncpa [#allocation9], 1 }
 0x1b4   :  { %1283 = vsyncpa [#allocation4], 1 }
 0x1b5   :  { %1284 = vsyncpa [#allocation12], 1 }

</bundles_post_ra>
